<compile_context>
chip_gen: v7x
topology: tpu7x:2x2x1
jax: 0.10.0
libtpu: 0.0.40
codegen_flags: <defaults>
</compile_context>

<pallas_src>
import functools

import jax
import jax.numpy as jnp
from jax.experimental import pallas as pl
from jax.experimental.pallas import tpu as pltpu


# ---------------------------------------------------------------------------
# Generation-aware tiling / compiler configuration
# ---------------------------------------------------------------------------
def _hw_config():
    """(vmem_limit_bytes, m_tile_target) tuned per TPU generation."""
    vmem_bytes = 64 * 1024 * 1024          # conservative default (v7x per-TC)
    try:
        info = pltpu.get_tpu_info()
        vmem_bytes = int(getattr(info, "vmem_capacity_bytes", vmem_bytes))
    except Exception:
        pass
    if vmem_bytes >= 128 * 1024 * 1024:    # v5e / v6e: 128 MiB VMEM
        return 100 * 1024 * 1024, 1024
    return 48 * 1024 * 1024, 512           # v7x: 64 MiB VMEM


_VMEM_LIMIT, _TM = _hw_config()


def _pick_tile(dim, target, align=16):
    """Largest tile <= target that evenly divides `dim` and is `align`-aligned
    (16 for bf16 sublane packing), or the full dim when it is small.
    Whenever dim > target this yields >= 2 tiles, so the 'parallel' M axis
    actually splits across v7x's two TensorCores."""
    if dim <= target:
        return dim
    t = (target // align) * align
    while t >= align:
        if dim % t == 0:
            return t
        t -= align
    return dim


def _compiler_params(dimension_semantics):
    return pltpu.CompilerParams(dimension_semantics=dimension_semantics,
                                vmem_limit_bytes=_VMEM_LIMIT)


# ---------------------------------------------------------------------------
# Pallas kernels
# ---------------------------------------------------------------------------
def _qkv_kernel(x_ref, wq_ref, wk_ref, wv_ref, bq_ref, bk_ref, bv_ref,
                q_ref, k_ref, v_ref, *, scale):
    """Fused Q/K/V projection: x read once, three MXU dots, weights resident.
    The attention 1/sqrt(hd) scale is folded into q here."""
    x = x_ref[...]                                           # (tm, H) bf16
    q = jnp.dot(x, wq_ref[...], preferred_element_type=jnp.float32) + bq_ref[...]
    k = jnp.dot(x, wk_ref[...], preferred_element_type=jnp.float32) + bk_ref[...]
    v = jnp.dot(x, wv_ref[...], preferred_element_type=jnp.float32) + bv_ref[...]
    q_ref[...] = (q * scale).astype(q_ref.dtype)
    k_ref[...] = k.astype(k_ref.dtype)
    v_ref[...] = v.astype(v_ref.dtype)


def qkv_projection(x, wq, wk, wv, bq, bk, bv, *, scale):
    """x:(M,K) bf16, w*:(K,N) bf16 -> (q, k, v) each (M,N) bf16."""
    M, K = x.shape
    N = wq.shape[1]
    tm = _pick_tile(M, _TM)
    x_spec = pl.BlockSpec((tm, K), lambda i: (i, 0))
    w_spec = pl.BlockSpec((K, N), lambda i: (0, 0))          # fully resident
    b_spec = pl.BlockSpec((1, N), lambda i: (0, 0))
    o_spec = pl.BlockSpec((tm, N), lambda i: (i, 0))
    out_sd = jax.ShapeDtypeStruct((M, N), jnp.bfloat16)
    return pl.pallas_call(
        functools.partial(_qkv_kernel, scale=scale),
        out_shape=(out_sd, out_sd, out_sd),
        grid=(M // tm,),
        in_specs=[x_spec, w_spec, w_spec, w_spec, b_spec, b_spec, b_spec],
        out_specs=(o_spec, o_spec, o_spec),
        compiler_params=_compiler_params(("parallel",)),
    )(x, wq, wk, wv, bq.reshape(1, N), bk.reshape(1, N), bv.reshape(1, N))


def _attention_kernel(q_ref, k_ref, v_ref, o_ref, *, num_heads, hd):
    """Softmax attention for ALL heads of one batch element.

    Blocks are (1, S, H) slices of the (B, S, H) layout -> no split/merge-head
    transposes.  Per-head contexts are concatenated and written with a single
    lane-dense full-width store.
    No attention mask: the spec's forward(text) passes no mask (HF defaults to
    an all-ones mask), so un-masked attention matches its semantics.
    """
    ctxs = []
    for h in range(num_heads):
        sl = pl.ds(h * hd, hd)
        q = q_ref[0, :, sl]                                  # (S, hd) bf16 (pre-scaled)
        k = k_ref[0, :, sl]
        v = v_ref[0, :, sl]
        s = jax.lax.dot_general(q, k, (((1,), (1,)), ((), ())),
                                preferred_element_type=jnp.float32)
        m = jnp.max(s, axis=-1, keepdims=True)
        p = jnp.exp(s - m)
        p = p * pl.reciprocal(jnp.sum(p, axis=-1, keepdims=True), approx=True)
        ctxs.append(jnp.dot(p.astype(v.dtype), v,
                            preferred_element_type=jnp.float32))
    o_ref[0, :, :] = jnp.concatenate(ctxs, axis=-1).astype(o_ref.dtype)


def attention(q, k, v, num_heads):
    """q/k/v: (B, S, H) bf16 -> context (B, S, H) bf16 (heads merged in-place)."""
    B, S, H = q.shape
    hd = H // num_heads
    # TODO(synk): for B == 1 on v7x, parallelize over query tiles instead of
    # batch so both TensorCores are used.
    spec = pl.BlockSpec((1, S, H), lambda b: (b, 0, 0))
    return pl.pallas_call(
        functools.partial(_attention_kernel, num_heads=num_heads, hd=hd),
        out_shape=jax.ShapeDtypeStruct((B, S, H), jnp.bfloat16),
        grid=(B,),
        in_specs=[spec, spec, spec],
        out_specs=spec,
        compiler_params=_compiler_params(("parallel",)),
    )(q, k, v)


def _out_proj_ln_kernel(x_ref, w_ref, b_ref, r_ref, g_ref, bt_ref, o_ref, *, eps):
    """o = LayerNorm(x @ w + b + residual) * g + bt. Weights resident, bf16 out."""
    y = jnp.dot(x_ref[...], w_ref[...],
                preferred_element_type=jnp.float32) + b_ref[...]
    y = y + r_ref[...].astype(jnp.float32)
    mu = jnp.mean(y, axis=-1, keepdims=True)
    yc = y - mu
    var = jnp.mean(yc * yc, axis=-1, keepdims=True)
    yn = yc * jax.lax.rsqrt(var + eps)
    o_ref[...] = (yn * g_ref[...] + bt_ref[...]).astype(o_ref.dtype)


def attn_out_layernorm(x, w, b, residual, gamma, beta, eps=1e-12):
    """x:(M,K) bf16, w:(K,H) bf16, residual:(M,H) bf16 -> (M,H) bf16."""
    M, K = x.shape
    _, H = w.shape
    tm = _pick_tile(M, _TM)
    return pl.pallas_call(
        functools.partial(_out_proj_ln_kernel, eps=eps),
        out_shape=jax.ShapeDtypeStruct((M, H), jnp.bfloat16),
        grid=(M // tm,),
        in_specs=[
            pl.BlockSpec((tm, K), lambda i: (i, 0)),
            pl.BlockSpec((K, H), lambda i: (0, 0)),          # resident
            pl.BlockSpec((1, H), lambda i: (0, 0)),
            pl.BlockSpec((tm, H), lambda i: (i, 0)),
            pl.BlockSpec((1, H), lambda i: (0, 0)),
            pl.BlockSpec((1, H), lambda i: (0, 0)),
        ],
        out_specs=pl.BlockSpec((tm, H), lambda i: (i, 0)),
        compiler_params=_compiler_params(("parallel",)),
    )(x, w, b.reshape(1, H), residual, gamma.reshape(1, H), beta.reshape(1, H))


def _ffn_ln_kernel(x_ref, w1_ref, b1_ref, w2_ref, b2_ref, g_ref, bt_ref,
                   o_ref, *, eps):
    """Fused FFN: o = LayerNorm(gelu(x@w1+b1) @ w2 + b2 + x) * g + bt.
    The (tm, FFN) intermediate lives only in VMEM/vregs."""
    x = x_ref[...]                                           # (tm, H) bf16
    h = jnp.dot(x, w1_ref[...], preferred_element_type=jnp.float32) + b1_ref[...]
    h = jax.nn.gelu(h, approximate=True).astype(jnp.bfloat16)   # tanh form -> EUP
    y = jnp.dot(h, w2_ref[...], preferred_element_type=jnp.float32) + b2_ref[...]
    y = y + x.astype(jnp.float32)                            # residual
    mu = jnp.mean(y, axis=-1, keepdims=True)
    yc = y - mu
    var = jnp.mean(yc * yc, axis=-1, keepdims=True)
    yn = yc * jax.lax.rsqrt(var + eps)
    o_ref[...] = (yn * g_ref[...] + bt_ref[...]).astype(o_ref.dtype)


def ffn_layernorm(x, w1, b1, w2, b2, gamma, beta, eps=1e-12):
    """x:(M,H) bf16, w1:(H,F) bf16, w2:(F,H) bf16 -> (M,H) bf16."""
    M, H = x.shape
    F = w1.shape[1]
    tm = _pick_tile(M, _TM)
    return pl.pallas_call(
        functools.partial(_ffn_ln_kernel, eps=eps),
        out_shape=jax.ShapeDtypeStruct((M, H), jnp.bfloat16),
        grid=(M // tm,),
        in_specs=[
            pl.BlockSpec((tm, H), lambda i: (i, 0)),
            pl.BlockSpec((H, F), lambda i: (0, 0)),          # resident
            pl.BlockSpec((1, F), lambda i: (0, 0)),
            pl.BlockSpec((F, H), lambda i: (0, 0)),          # resident
            pl.BlockSpec((1, H), lambda i: (0, 0)),
            pl.BlockSpec((1, H), lambda i: (0, 0)),
            pl.BlockSpec((1, H), lambda i: (0, 0)),
        ],
        out_specs=pl.BlockSpec((tm, H), lambda i: (i, 0)),
        compiler_params=_compiler_params(("parallel",)),
    )(x, w1, b1.reshape(1, F), w2, b2.reshape(1, H),
      gamma.reshape(1, H), beta.reshape(1, H))


def _layernorm_kernel(x_ref, g_ref, b_ref, o_ref, *, eps):
    x = x_ref[...].astype(jnp.float32)
    mu = jnp.mean(x, axis=-1, keepdims=True)
    xc = x - mu
    var = jnp.mean(xc * xc, axis=-1, keepdims=True)
    y = xc * jax.lax.rsqrt(var + eps)
    o_ref[...] = (y * g_ref[...] + b_ref[...]).astype(o_ref.dtype)


def layernorm(x, gamma, beta, eps=1e-12):
    """Embedding LayerNorm: f32 in, bf16 out (LN math in f32)."""
    M, H = x.shape
    tm = _pick_tile(M, max(_TM, 1024))
    return pl.pallas_call(
        functools.partial(_layernorm_kernel, eps=eps),
        out_shape=jax.ShapeDtypeStruct((M, H), jnp.bfloat16),
        grid=(M // tm,),
        in_specs=[
            pl.BlockSpec((tm, H), lambda i: (i, 0)),
            pl.BlockSpec((1, H), lambda i: (0, 0)),
            pl.BlockSpec((1, H), lambda i: (0, 0)),
        ],
        out_specs=pl.BlockSpec((tm, H), lambda i: (i, 0)),
        compiler_params=_compiler_params(("parallel",)),
    )(x, gamma.reshape(1, H), beta.reshape(1, H))


# ---------------------------------------------------------------------------
# Synthetic BERT-style encoder (deterministic init, bf16 weights)
# ---------------------------------------------------------------------------
def init_params(key, vocab_size, max_pos, hidden, ffn, num_layers):
    std = 0.02
    wdt = jnp.bfloat16   # bf16 weights: MXU-native operands, half the HBM/VMEM bytes
    keys = jax.random.split(key, 2 + num_layers)
    params = {
        "word_emb": jax.random.normal(keys[0], (vocab_size, hidden), jnp.float32) * std,
        "pos_emb": jax.random.normal(keys[1], (max_pos, hidden), jnp.float32) * std,
        "emb_ln_g": jnp.ones((hidden,), jnp.float32),
        "emb_ln_b": jnp.zeros((hidden,), jnp.float32),
        "layers": [],
    }
    for l in range(num_layers):
        lk = jax.random.split(keys[2 + l], 6)
        layer = {
            "wq": (jax.random.normal(lk[0], (hidden, hidden), jnp.float32) * std).astype(wdt),
            "bq": jnp.zeros((hidden,), jnp.float32),
            "wk": (jax.random.normal(lk[1], (hidden, hidden), jnp.float32) * std).astype(wdt),
            "bk": jnp.zeros((hidden,), jnp.float32),
            "wv": (jax.random.normal(lk[2], (hidden, hidden), jnp.float32) * std).astype(wdt),
            "bv": jnp.zeros((hidden,), jnp.float32),
            "wo": (jax.random.normal(lk[3], (hidden, hidden), jnp.float32) * std).astype(wdt),
            "bo": jnp.zeros((hidden,), jnp.float32),
            "ln1_g": jnp.ones((hidden,), jnp.float32),
            "ln1_b": jnp.zeros((hidden,), jnp.float32),
            "w_ff1": (jax.random.normal(lk[4], (hidden, ffn), jnp.float32) * std).astype(wdt),
            "b_ff1": jnp.zeros((ffn,), jnp.float32),
            "w_ff2": (jax.random.normal(lk[5], (ffn, hidden), jnp.float32) * std).astype(wdt),
            "b_ff2": jnp.zeros((hidden,), jnp.float32),
            "ln2_g": jnp.ones((hidden,), jnp.float32),
            "ln2_b": jnp.zeros((hidden,), jnp.float32),
        }
        params["layers"].append(layer)
    return params


def encoder_layer(x2d, p, B, S, H, num_heads):
    """One BERT encoder layer on a (B*S, H) bf16 slab."""
    hd = H // num_heads
    q2d, k2d, v2d = qkv_projection(x2d, p["wq"], p["wk"], p["wv"],
                                   p["bq"], p["bk"], p["bv"],
                                   scale=1.0 / (hd ** 0.5))
    ctx = attention(q2d.reshape(B, S, H), k2d.reshape(B, S, H),
                    v2d.reshape(B, S, H), num_heads)                 # (B,S,H) bf16

    # attention output projection fused with residual-add + LayerNorm (bf16 out)
    x2d = attn_out_layernorm(ctx.reshape(B * S, H), p["wo"], p["bo"],
                             x2d, p["ln1_g"], p["ln1_b"])

    # fully fused FFN: GELU(x@w1+b1)@w2 + b2 + residual -> LayerNorm (bf16 out)
    x2d = ffn_layernorm(x2d, p["w_ff1"], p["b_ff1"], p["w_ff2"], p["b_ff2"],
                        p["ln2_g"], p["ln2_b"])
    return x2d


def sentences_vec_forward(params, text, *, num_heads, layer_index=-2):
    """text: (batch, seq) int32 -> hidden_states[layer_index]: (batch, seq, hidden)."""
    B, S = text.shape
    H = params["word_emb"].shape[1]

    # Embedding lookup (glue, plain JAX) + LayerNorm (Pallas, bf16 out).
    we = jnp.take(params["word_emb"], text, axis=0)          # (B, S, H)
    pe = params["pos_emb"][:S][None, :, :]                   # (1, S, H)
    emb2d = (we + pe).reshape(B * S, H)
    x2d = layernorm(emb2d, params["emb_ln_g"], params["emb_ln_b"])

    # HF-style hidden_states: embeddings output + one entry per layer.
    # (Layers after layer_index are unused and dead-code-eliminated under jit.)
    hidden_states = [x2d.reshape(B, S, H)]
    for p in params["layers"]:
        x2d = encoder_layer(x2d, p, B, S, H, num_heads)
        hidden_states.append(x2d.reshape(B, S, H))

    return hidden_states[layer_index].astype(jnp.float32)


# ---------------------------------------------------------------------------
if __name__ == "__main__":
    BATCH, SEQ = 2, 8
    HIDDEN, FFN, NUM_HEADS, NUM_LAYERS = 32, 64, 4, 3
    VOCAB, MAX_POS = 100, 64
    LAYER_INDEX = -2   # same default semantics as sentencesVec(layer_index=-2)

    key = jax.random.PRNGKey(0)
    pkey, tkey = jax.random.split(key)
    params = init_params(pkey, VOCAB, MAX_POS, HIDDEN, FFN, NUM_LAYERS)
    text = jax.random.randint(tkey, (BATCH, SEQ), 0, VOCAB, dtype=jnp.int32)

    fwd = jax.jit(functools.partial(sentences_vec_forward,
                                    num_heads=NUM_HEADS,
                                    layer_index=LAYER_INDEX))
    out = fwd(params, text)
    out = jax.block_until_ready(out)

    assert out.shape == (BATCH, SEQ, HIDDEN), out.shape
    assert out.dtype == jnp.float32
    assert bool(jnp.all(jnp.isfinite(out)))
    print("KERNEL_OK")
</pallas_src>

<mosaic_0001>
module attributes {stable_mosaic.version = 11 : i64} {
  func.func @_attention_kernel(%arg0: i32, %arg1: memref<1x8x32xbf16, #tpu.memory_space<vmem>>, %arg2: memref<1x8x32xbf16, #tpu.memory_space<vmem>>, %arg3: memref<1x8x32xbf16, #tpu.memory_space<vmem>>, %arg4: memref<1x8x32xbf16, #tpu.memory_space<vmem>>) attributes {dimension_semantics = [#tpu.dimension_semantics<parallel>], iteration_bounds = array<i64: 2>, scalar_prefetch = 0 : i64, scratch_operands = 0 : i64, tpu.core_type = #tpu.core_type<tc>, window_params = [{transform_indices = @transform_0, window_bounds = array<i64: 1, 8, 32>}, {transform_indices = @transform_1, window_bounds = array<i64: 1, 8, 32>}, {transform_indices = @transform_2, window_bounds = array<i64: 1, 8, 32>}, {transform_indices = @transform_3, window_bounds = array<i64: 1, 8, 32>}]} {
    %c0 = arith.constant 0 : index
    %c0_0 = arith.constant 0 : index
    %c0_1 = arith.constant 0 : index
    %0 = vector.load %arg1[%c0, %c0_0, %c0_1] : memref<1x8x32xbf16, #tpu.memory_space<vmem>>, vector<1x8x8xbf16>
    %1 = vector.shape_cast %0 : vector<1x8x8xbf16> to vector<8x8xbf16>
    %c0_2 = arith.constant 0 : index
    %c0_3 = arith.constant 0 : index
    %c0_4 = arith.constant 0 : index
    %2 = vector.load %arg2[%c0_2, %c0_3, %c0_4] : memref<1x8x32xbf16, #tpu.memory_space<vmem>>, vector<1x8x8xbf16>
    %3 = vector.shape_cast %2 : vector<1x8x8xbf16> to vector<8x8xbf16>
    %c0_5 = arith.constant 0 : index
    %c0_6 = arith.constant 0 : index
    %c0_7 = arith.constant 0 : index
    %4 = vector.load %arg3[%c0_5, %c0_6, %c0_7] : memref<1x8x32xbf16, #tpu.memory_space<vmem>>, vector<1x8x8xbf16>
    %5 = vector.shape_cast %4 : vector<1x8x8xbf16> to vector<8x8xbf16>
    %cst = arith.constant dense<0.000000e+00> : vector<8x8xf32>
    %6 = tpu.matmul %1, %3, %cst {dimension_numbers = #tpu.dot_dimension_numbers<[1], [1], [0], [0], [0, 0, 1, 0], [], []>} : vector<8x8xbf16>, vector<8x8xbf16>, vector<8x8xf32> -> vector<8x8xf32>
    %cst_8 = arith.constant dense<0xFF800000> : vector<8xf32>
    %7 = vector.multi_reduction <maximumf>, %6, %cst_8 [1] : vector<8x8xf32> to vector<8xf32>
    %8 = vector.shape_cast %7 : vector<8xf32> to vector<8x1xf32>
    %9 = vector.broadcast %8 : vector<8x1xf32> to vector<8x8xf32>
    %10 = arith.subf %6, %9 : vector<8x8xf32>
    %11 = math.exp %10 : vector<8x8xf32>
    %cst_9 = arith.constant dense<0.000000e+00> : vector<8xf32>
    %12 = vector.multi_reduction <add>, %11, %cst_9 [1] : vector<8x8xf32> to vector<8xf32>
    %13 = vector.shape_cast %12 : vector<8xf32> to vector<8x1xf32>
    %14 = tpu.reciprocal %13 {approx = true} : vector<8x1xf32> -> vector<8x1xf32>
    %15 = vector.broadcast %14 : vector<8x1xf32> to vector<8x8xf32>
    %16 = arith.mulf %11, %15 : vector<8x8xf32>
    %17 = arith.truncf %16 : vector<8x8xf32> to vector<8x8xbf16>
    %cst_10 = arith.constant dense<0.000000e+00> : vector<8x8xf32>
    %18 = tpu.matmul %17, %5, %cst_10 {dimension_numbers = #tpu.dot_dimension_numbers<[1], [0], [0], [1], [0, 0, 1, 1], [], []>} : vector<8x8xbf16>, vector<8x8xbf16>, vector<8x8xf32> -> vector<8x8xf32>
    %c0_11 = arith.constant 0 : index
    %c0_12 = arith.constant 0 : index
    %c8 = arith.constant 8 : index
    %19 = vector.load %arg1[%c0_11, %c0_12, %c8] : memref<1x8x32xbf16, #tpu.memory_space<vmem>>, vector<1x8x8xbf16>
    %20 = vector.shape_cast %19 : vector<1x8x8xbf16> to vector<8x8xbf16>
    %c0_13 = arith.constant 0 : index
    %c0_14 = arith.constant 0 : index
    %c8_15 = arith.constant 8 : index
    %21 = vector.load %arg2[%c0_13, %c0_14, %c8_15] : memref<1x8x32xbf16, #tpu.memory_space<vmem>>, vector<1x8x8xbf16>
    %22 = vector.shape_cast %21 : vector<1x8x8xbf16> to vector<8x8xbf16>
    %c0_16 = arith.constant 0 : index
    %c0_17 = arith.constant 0 : index
    %c8_18 = arith.constant 8 : index
    %23 = vector.load %arg3[%c0_16, %c0_17, %c8_18] : memref<1x8x32xbf16, #tpu.memory_space<vmem>>, vector<1x8x8xbf16>
    %24 = vector.shape_cast %23 : vector<1x8x8xbf16> to vector<8x8xbf16>
    %cst_19 = arith.constant dense<0.000000e+00> : vector<8x8xf32>
    %25 = tpu.matmul %20, %22, %cst_19 {dimension_numbers = #tpu.dot_dimension_numbers<[1], [1], [0], [0], [0, 0, 1, 0], [], []>} : vector<8x8xbf16>, vector<8x8xbf16>, vector<8x8xf32> -> vector<8x8xf32>
    %cst_20 = arith.constant dense<0xFF800000> : vector<8xf32>
    %26 = vector.multi_reduction <maximumf>, %25, %cst_20 [1] : vector<8x8xf32> to vector<8xf32>
    %27 = vector.shape_cast %26 : vector<8xf32> to vector<8x1xf32>
    %28 = vector.broadcast %27 : vector<8x1xf32> to vector<8x8xf32>
    %29 = arith.subf %25, %28 : vector<8x8xf32>
    %30 = math.exp %29 : vector<8x8xf32>
    %cst_21 = arith.constant dense<0.000000e+00> : vector<8xf32>
    %31 = vector.multi_reduction <add>, %30, %cst_21 [1] : vector<8x8xf32> to vector<8xf32>
    %32 = vector.shape_cast %31 : vector<8xf32> to vector<8x1xf32>
    %33 = tpu.reciprocal %32 {approx = true} : vector<8x1xf32> -> vector<8x1xf32>
    %34 = vector.broadcast %33 : vector<8x1xf32> to vector<8x8xf32>
    %35 = arith.mulf %30, %34 : vector<8x8xf32>
    %36 = arith.truncf %35 : vector<8x8xf32> to vector<8x8xbf16>
    %cst_22 = arith.constant dense<0.000000e+00> : vector<8x8xf32>
    %37 = tpu.matmul %36, %24, %cst_22 {dimension_numbers = #tpu.dot_dimension_numbers<[1], [0], [0], [1], [0, 0, 1, 1], [], []>} : vector<8x8xbf16>, vector<8x8xbf16>, vector<8x8xf32> -> vector<8x8xf32>
    %c0_23 = arith.constant 0 : index
    %c0_24 = arith.constant 0 : index
    %c16 = arith.constant 16 : index
    %38 = vector.load %arg1[%c0_23, %c0_24, %c16] : memref<1x8x32xbf16, #tpu.memory_space<vmem>>, vector<1x8x8xbf16>
    %39 = vector.shape_cast %38 : vector<1x8x8xbf16> to vector<8x8xbf16>
    %c0_25 = arith.constant 0 : index
    %c0_26 = arith.constant 0 : index
    %c16_27 = arith.constant 16 : index
    %40 = vector.load %arg2[%c0_25, %c0_26, %c16_27] : memref<1x8x32xbf16, #tpu.memory_space<vmem>>, vector<1x8x8xbf16>
    %41 = vector.shape_cast %40 : vector<1x8x8xbf16> to vector<8x8xbf16>
    %c0_28 = arith.constant 0 : index
    %c0_29 = arith.constant 0 : index
    %c16_30 = arith.constant 16 : index
    %42 = vector.load %arg3[%c0_28, %c0_29, %c16_30] : memref<1x8x32xbf16, #tpu.memory_space<vmem>>, vector<1x8x8xbf16>
    %43 = vector.shape_cast %42 : vector<1x8x8xbf16> to vector<8x8xbf16>
    %cst_31 = arith.constant dense<0.000000e+00> : vector<8x8xf32>
    %44 = tpu.matmul %39, %41, %cst_31 {dimension_numbers = #tpu.dot_dimension_numbers<[1], [1], [0], [0], [0, 0, 1, 0], [], []>} : vector<8x8xbf16>, vector<8x8xbf16>, vector<8x8xf32> -> vector<8x8xf32>
    %cst_32 = arith.constant dense<0xFF800000> : vector<8xf32>
    %45 = vector.multi_reduction <maximumf>, %44, %cst_32 [1] : vector<8x8xf32> to vector<8xf32>
    %46 = vector.shape_cast %45 : vector<8xf32> to vector<8x1xf32>
    %47 = vector.broadcast %46 : vector<8x1xf32> to vector<8x8xf32>
    %48 = arith.subf %44, %47 : vector<8x8xf32>
    %49 = math.exp %48 : vector<8x8xf32>
    %cst_33 = arith.constant dense<0.000000e+00> : vector<8xf32>
    %50 = vector.multi_reduction <add>, %49, %cst_33 [1] : vector<8x8xf32> to vector<8xf32>
    %51 = vector.shape_cast %50 : vector<8xf32> to vector<8x1xf32>
    %52 = tpu.reciprocal %51 {approx = true} : vector<8x1xf32> -> vector<8x1xf32>
    %53 = vector.broadcast %52 : vector<8x1xf32> to vector<8x8xf32>
    %54 = arith.mulf %49, %53 : vector<8x8xf32>
    %55 = arith.truncf %54 : vector<8x8xf32> to vector<8x8xbf16>
    %cst_34 = arith.constant dense<0.000000e+00> : vector<8x8xf32>
    %56 = tpu.matmul %55, %43, %cst_34 {dimension_numbers = #tpu.dot_dimension_numbers<[1], [0], [0], [1], [0, 0, 1, 1], [], []>} : vector<8x8xbf16>, vector<8x8xbf16>, vector<8x8xf32> -> vector<8x8xf32>
    %c0_35 = arith.constant 0 : index
    %c0_36 = arith.constant 0 : index
    %c24 = arith.constant 24 : index
    %57 = vector.load %arg1[%c0_35, %c0_36, %c24] : memref<1x8x32xbf16, #tpu.memory_space<vmem>>, vector<1x8x8xbf16>
    %58 = vector.shape_cast %57 : vector<1x8x8xbf16> to vector<8x8xbf16>
    %c0_37 = arith.constant 0 : index
    %c0_38 = arith.constant 0 : index
    %c24_39 = arith.constant 24 : index
    %59 = vector.load %arg2[%c0_37, %c0_38, %c24_39] : memref<1x8x32xbf16, #tpu.memory_space<vmem>>, vector<1x8x8xbf16>
    %60 = vector.shape_cast %59 : vector<1x8x8xbf16> to vector<8x8xbf16>
    %c0_40 = arith.constant 0 : index
    %c0_41 = arith.constant 0 : index
    %c24_42 = arith.constant 24 : index
    %61 = vector.load %arg3[%c0_40, %c0_41, %c24_42] : memref<1x8x32xbf16, #tpu.memory_space<vmem>>, vector<1x8x8xbf16>
    %62 = vector.shape_cast %61 : vector<1x8x8xbf16> to vector<8x8xbf16>
    %cst_43 = arith.constant dense<0.000000e+00> : vector<8x8xf32>
    %63 = tpu.matmul %58, %60, %cst_43 {dimension_numbers = #tpu.dot_dimension_numbers<[1], [1], [0], [0], [0, 0, 1, 0], [], []>} : vector<8x8xbf16>, vector<8x8xbf16>, vector<8x8xf32> -> vector<8x8xf32>
    %cst_44 = arith.constant dense<0xFF800000> : vector<8xf32>
    %64 = vector.multi_reduction <maximumf>, %63, %cst_44 [1] : vector<8x8xf32> to vector<8xf32>
    %65 = vector.shape_cast %64 : vector<8xf32> to vector<8x1xf32>
    %66 = vector.broadcast %65 : vector<8x1xf32> to vector<8x8xf32>
    %67 = arith.subf %63, %66 : vector<8x8xf32>
    %68 = math.exp %67 : vector<8x8xf32>
    %cst_45 = arith.constant dense<0.000000e+00> : vector<8xf32>
    %69 = vector.multi_reduction <add>, %68, %cst_45 [1] : vector<8x8xf32> to vector<8xf32>
    %70 = vector.shape_cast %69 : vector<8xf32> to vector<8x1xf32>
    %71 = tpu.reciprocal %70 {approx = true} : vector<8x1xf32> -> vector<8x1xf32>
    %72 = vector.broadcast %71 : vector<8x1xf32> to vector<8x8xf32>
    %73 = arith.mulf %68, %72 : vector<8x8xf32>
    %74 = arith.truncf %73 : vector<8x8xf32> to vector<8x8xbf16>
    %cst_46 = arith.constant dense<0.000000e+00> : vector<8x8xf32>
    %75 = tpu.matmul %74, %62, %cst_46 {dimension_numbers = #tpu.dot_dimension_numbers<[1], [0], [0], [1], [0, 0, 1, 1], [], []>} : vector<8x8xbf16>, vector<8x8xbf16>, vector<8x8xf32> -> vector<8x8xf32>
    %76 = tpu.concatenate %18, %37, %56, %75 in 1 : vector<8x8xf32>, vector<8x8xf32>, vector<8x8xf32>, vector<8x8xf32> -> vector<8x32xf32>
    %77 = arith.truncf %76 : vector<8x32xf32> to vector<8x32xbf16>
    %c0_47 = arith.constant 0 : index
    %c0_48 = arith.constant 0 : index
    %c0_49 = arith.constant 0 : index
    %78 = vector.load %arg4[%c0_47, %c0_48, %c0_49] : memref<1x8x32xbf16, #tpu.memory_space<vmem>>, vector<1x8x32xbf16>
    %79 = vector.shape_cast %78 : vector<1x8x32xbf16> to vector<8x32xbf16>
    %80 = vector.shape_cast %77 : vector<8x32xbf16> to vector<1x8x32xbf16>
    tpu.vector_store %arg4[%c0_47, %c0_48, %c0_49], %80 {strides = array<i32>} : memref<1x8x32xbf16, #tpu.memory_space<vmem>>, vector<1x8x32xbf16>,
    return
  }
  func.func @transform_0(%arg0: i32) -> (i32, i32, i32) {
    %c0_i32 = arith.constant 0 : i32
    %c0_i32_0 = arith.constant 0 : i32
    %c0_i32_1 = arith.constant 0 : i32
    return %arg0, %c0_i32, %c0_i32_0 : i32, i32, i32
  }
  func.func @transform_1(%arg0: i32) -> (i32, i32, i32) {
    %c0_i32 = arith.constant 0 : i32
    %c0_i32_0 = arith.constant 0 : i32
    %c0_i32_1 = arith.constant 0 : i32
    return %arg0, %c0_i32, %c0_i32_0 : i32, i32, i32
  }
  func.func @transform_2(%arg0: i32) -> (i32, i32, i32) {
    %c0_i32 = arith.constant 0 : i32
    %c0_i32_0 = arith.constant 0 : i32
    %c0_i32_1 = arith.constant 0 : i32
    return %arg0, %c0_i32, %c0_i32_0 : i32, i32, i32
  }
  func.func @transform_3(%arg0: i32) -> (i32, i32, i32) {
    %c0_i32 = arith.constant 0 : i32
    %c0_i32_0 = arith.constant 0 : i32
    %c0_i32_1 = arith.constant 0 : i32
    return %arg0, %c0_i32, %c0_i32_0 : i32, i32, i32
  }
}

module attributes {stable_mosaic.version = 11 : i64} {
  func.func @_qkv_kernel(%arg0: i32, %arg1: memref<16x32xbf16, #tpu.memory_space<vmem>>, %arg2: memref<32x32xbf16, #tpu.memory_space<vmem>>, %arg3: memref<32x32xbf16, #tpu.memory_space<vmem>>, %arg4: memref<32x32xbf16, #tpu.memory_space<vmem>>, %arg5: memref<1x32xf32, #tpu.memory_space<vmem>>, %arg6: memref<1x32xf32, #tpu.memory_space<vmem>>, %arg7: memref<1x32xf32, #tpu.memory_space<vmem>>, %arg8: memref<16x32xbf16, #tpu.memory_space<vmem>>, %arg9: memref<16x32xbf16, #tpu.memory_space<vmem>>, %arg10: memref<16x32xbf16, #tpu.memory_space<vmem>>) attributes {dimension_semantics = [#tpu.dimension_semantics<parallel>], iteration_bounds = array<i64: 1>, scalar_prefetch = 0 : i64, scratch_operands = 0 : i64, tpu.core_type = #tpu.core_type<tc>, window_params = [{transform_indices = @transform_0, window_bounds = array<i64: 16, 32>}, {pipeline_mode = #tpu.pipeline_mode<synchronous>, transform_indices = @transform_1, window_bounds = array<i64: 32, 32>}, {pipeline_mode = #tpu.pipeline_mode<synchronous>, transform_indices = @transform_2, window_bounds = array<i64: 32, 32>}, {pipeline_mode = #tpu.pipeline_mode<synchronous>, transform_indices = @transform_3, window_bounds = array<i64: 32, 32>}, {pipeline_mode = #tpu.pipeline_mode<synchronous>, transform_indices = @transform_4, window_bounds = array<i64: 1, 32>}, {pipeline_mode = #tpu.pipeline_mode<synchronous>, transform_indices = @transform_5, window_bounds = array<i64: 1, 32>}, {pipeline_mode = #tpu.pipeline_mode<synchronous>, transform_indices = @transform_6, window_bounds = array<i64: 1, 32>}, {transform_indices = @transform_7, window_bounds = array<i64: 16, 32>}, {transform_indices = @transform_8, window_bounds = array<i64: 16, 32>}, {transform_indices = @transform_9, window_bounds = array<i64: 16, 32>}]} {
    %c0 = arith.constant 0 : index
    %c0_0 = arith.constant 0 : index
    %0 = vector.load %arg1[%c0, %c0_0] : memref<16x32xbf16, #tpu.memory_space<vmem>>, vector<16x32xbf16>
    %c0_1 = arith.constant 0 : index
    %c0_2 = arith.constant 0 : index
    %1 = vector.load %arg2[%c0_1, %c0_2] : memref<32x32xbf16, #tpu.memory_space<vmem>>, vector<32x32xbf16>
    %cst = arith.constant dense<0.000000e+00> : vector<16x32xf32>
    %2 = tpu.matmul %0, %1, %cst {dimension_numbers = #tpu.dot_dimension_numbers<[1], [0], [0], [1], [0, 0, 1, 1], [], []>} : vector<16x32xbf16>, vector<32x32xbf16>, vector<16x32xf32> -> vector<16x32xf32>
    %c0_3 = arith.constant 0 : index
    %c0_4 = arith.constant 0 : index
    %3 = vector.load %arg5[%c0_3, %c0_4] : memref<1x32xf32, #tpu.memory_space<vmem>>, vector<1x32xf32>
    %4 = vector.broadcast %3 : vector<1x32xf32> to vector<16x32xf32>
    %5 = arith.addf %2, %4 : vector<16x32xf32>
    %c0_5 = arith.constant 0 : index
    %c0_6 = arith.constant 0 : index
    %6 = vector.load %arg3[%c0_5, %c0_6] : memref<32x32xbf16, #tpu.memory_space<vmem>>, vector<32x32xbf16>
    %cst_7 = arith.constant dense<0.000000e+00> : vector<16x32xf32>
    %7 = tpu.matmul %0, %6, %cst_7 {dimension_numbers = #tpu.dot_dimension_numbers<[1], [0], [0], [1], [0, 0, 1, 1], [], []>} : vector<16x32xbf16>, vector<32x32xbf16>, vector<16x32xf32> -> vector<16x32xf32>
    %c0_8 = arith.constant 0 : index
    %c0_9 = arith.constant 0 : index
    %8 = vector.load %arg6[%c0_8, %c0_9] : memref<1x32xf32, #tpu.memory_space<vmem>>, vector<1x32xf32>
    %9 = vector.broadcast %8 : vector<1x32xf32> to vector<16x32xf32>
    %10 = arith.addf %7, %9 : vector<16x32xf32>
    %c0_10 = arith.constant 0 : index
    %c0_11 = arith.constant 0 : index
    %11 = vector.load %arg4[%c0_10, %c0_11] : memref<32x32xbf16, #tpu.memory_space<vmem>>, vector<32x32xbf16>
    %cst_12 = arith.constant dense<0.000000e+00> : vector<16x32xf32>
    %12 = tpu.matmul %0, %11, %cst_12 {dimension_numbers = #tpu.dot_dimension_numbers<[1], [0], [0], [1], [0, 0, 1, 1], [], []>} : vector<16x32xbf16>, vector<32x32xbf16>, vector<16x32xf32> -> vector<16x32xf32>
    %c0_13 = arith.constant 0 : index
    %c0_14 = arith.constant 0 : index
    %13 = vector.load %arg7[%c0_13, %c0_14] : memref<1x32xf32, #tpu.memory_space<vmem>>, vector<1x32xf32>
    %14 = vector.broadcast %13 : vector<1x32xf32> to vector<16x32xf32>
    %15 = arith.addf %12, %14 : vector<16x32xf32>
    %cst_15 = arith.constant 0.353553385 : f32
    %16 = vector.broadcast %cst_15 : f32 to vector<16x32xf32>
    %17 = arith.mulf %5, %16 : vector<16x32xf32>
    %18 = arith.truncf %17 : vector<16x32xf32> to vector<16x32xbf16>
    %c0_16 = arith.constant 0 : index
    %c0_17 = arith.constant 0 : index
    %19 = vector.load %arg8[%c0_16, %c0_17] : memref<16x32xbf16, #tpu.memory_space<vmem>>, vector<16x32xbf16>
    tpu.vector_store %arg8[%c0_16, %c0_17], %18 {strides = array<i32>} : memref<16x32xbf16, #tpu.memory_space<vmem>>, vector<16x32xbf16>,
    %20 = arith.truncf %10 : vector<16x32xf32> to vector<16x32xbf16>
    %c0_18 = arith.constant 0 : index
    %c0_19 = arith.constant 0 : index
    %21 = vector.load %arg9[%c0_18, %c0_19] : memref<16x32xbf16, #tpu.memory_space<vmem>>, vector<16x32xbf16>
    tpu.vector_store %arg9[%c0_18, %c0_19], %20 {strides = array<i32>} : memref<16x32xbf16, #tpu.memory_space<vmem>>, vector<16x32xbf16>,
    %22 = arith.truncf %15 : vector<16x32xf32> to vector<16x32xbf16>
    %c0_20 = arith.constant 0 : index
    %c0_21 = arith.constant 0 : index
    %23 = vector.load %arg10[%c0_20, %c0_21] : memref<16x32xbf16, #tpu.memory_space<vmem>>, vector<16x32xbf16>
    tpu.vector_store %arg10[%c0_20, %c0_21], %22 {strides = array<i32>} : memref<16x32xbf16, #tpu.memory_space<vmem>>, vector<16x32xbf16>,
    return
  }
  func.func @transform_0(%arg0: i32) -> (i32, i32) {
    %c0_i32 = arith.constant 0 : i32
    %c0_i32_0 = arith.constant 0 : i32
    return %arg0, %c0_i32 : i32, i32
  }
  func.func @transform_1(%arg0: i32) -> (i32, i32) {
    %c0_i32 = arith.constant 0 : i32
    %c0_i32_0 = arith.constant 0 : i32
    %c0_i32_1 = arith.constant 0 : i32
    return %c0_i32, %c0_i32_0 : i32, i32
  }
  func.func @transform_2(%arg0: i32) -> (i32, i32) {
    %c0_i32 = arith.constant 0 : i32
    %c0_i32_0 = arith.constant 0 : i32
    %c0_i32_1 = arith.constant 0 : i32
    return %c0_i32, %c0_i32_0 : i32, i32
  }
  func.func @transform_3(%arg0: i32) -> (i32, i32) {
    %c0_i32 = arith.constant 0 : i32
    %c0_i32_0 = arith.constant 0 : i32
    %c0_i32_1 = arith.constant 0 : i32
    return %c0_i32, %c0_i32_0 : i32, i32
  }
  func.func @transform_4(%arg0: i32) -> (i32, i32) {
    %c0_i32 = arith.constant 0 : i32
    %c0_i32_0 = arith.constant 0 : i32
    %c0_i32_1 = arith.constant 0 : i32
    return %c0_i32, %c0_i32_0 : i32, i32
  }
  func.func @transform_5(%arg0: i32) -> (i32, i32) {
    %c0_i32 = arith.constant 0 : i32
    %c0_i32_0 = arith.constant 0 : i32
    %c0_i32_1 = arith.constant 0 : i32
    return %c0_i32, %c0_i32_0 : i32, i32
  }
  func.func @transform_6(%arg0: i32) -> (i32, i32) {
    %c0_i32 = arith.constant 0 : i32
    %c0_i32_0 = arith.constant 0 : i32
    %c0_i32_1 = arith.constant 0 : i32
    return %c0_i32, %c0_i32_0 : i32, i32
  }
  func.func @transform_7(%arg0: i32) -> (i32, i32) {
    %c0_i32 = arith.constant 0 : i32
    %c0_i32_0 = arith.constant 0 : i32
    return %arg0, %c0_i32 : i32, i32
  }
  func.func @transform_8(%arg0: i32) -> (i32, i32) {
    %c0_i32 = arith.constant 0 : i32
    %c0_i32_0 = arith.constant 0 : i32
    return %arg0, %c0_i32 : i32, i32
  }
  func.func @transform_9(%arg0: i32) -> (i32, i32) {
    %c0_i32 = arith.constant 0 : i32
    %c0_i32_0 = arith.constant 0 : i32
    return %arg0, %c0_i32 : i32, i32
  }
}

module attributes {stable_mosaic.version = 11 : i64} {
  func.func @_layernorm_kernel(%arg0: i32, %arg1: memref<16x32xf32, #tpu.memory_space<vmem>>, %arg2: memref<1x32xf32, #tpu.memory_space<vmem>>, %arg3: memref<1x32xf32, #tpu.memory_space<vmem>>, %arg4: memref<16x32xbf16, #tpu.memory_space<vmem>>) attributes {dimension_semantics = [#tpu.dimension_semantics<parallel>], iteration_bounds = array<i64: 1>, scalar_prefetch = 0 : i64, scratch_operands = 0 : i64, tpu.core_type = #tpu.core_type<tc>, window_params = [{transform_indices = @transform_0, window_bounds = array<i64: 16, 32>}, {pipeline_mode = #tpu.pipeline_mode<synchronous>, transform_indices = @transform_1, window_bounds = array<i64: 1, 32>}, {pipeline_mode = #tpu.pipeline_mode<synchronous>, transform_indices = @transform_2, window_bounds = array<i64: 1, 32>}, {transform_indices = @transform_3, window_bounds = array<i64: 16, 32>}]} {
    %c0 = arith.constant 0 : index
    %c0_0 = arith.constant 0 : index
    %0 = vector.load %arg1[%c0, %c0_0] : memref<16x32xf32, #tpu.memory_space<vmem>>, vector<16x32xf32>
    %cst = arith.constant dense<0.000000e+00> : vector<16xf32>
    %1 = vector.multi_reduction <add>, %0, %cst [1] : vector<16x32xf32> to vector<16xf32>
    %2 = vector.shape_cast %1 : vector<16xf32> to vector<16x1xf32>
    %cst_1 = arith.constant 3.200000e+01 : f32
    %3 = vector.broadcast %cst_1 : f32 to vector<16x1xf32>
    %4 = arith.divf %2, %3 : vector<16x1xf32>
    %5 = vector.broadcast %4 : vector<16x1xf32> to vector<16x32xf32>
    %6 = arith.subf %0, %5 : vector<16x32xf32>
    %7 = arith.mulf %6, %6 : vector<16x32xf32>
    %cst_2 = arith.constant dense<0.000000e+00> : vector<16xf32>
    %8 = vector.multi_reduction <add>, %7, %cst_2 [1] : vector<16x32xf32> to vector<16xf32>
    %9 = vector.shape_cast %8 : vector<16xf32> to vector<16x1xf32>
    %cst_3 = arith.constant 3.200000e+01 : f32
    %10 = vector.broadcast %cst_3 : f32 to vector<16x1xf32>
    %11 = arith.divf %9, %10 : vector<16x1xf32>
    %cst_4 = arith.constant 9.99999996E-13 : f32
    %12 = vector.broadcast %cst_4 : f32 to vector<16x1xf32>
    %13 = arith.addf %11, %12 : vector<16x1xf32>
    %14 = math.rsqrt %13 : vector<16x1xf32>
    %15 = vector.broadcast %14 : vector<16x1xf32> to vector<16x32xf32>
    %16 = arith.mulf %6, %15 : vector<16x32xf32>
    %c0_5 = arith.constant 0 : index
    %c0_6 = arith.constant 0 : index
    %17 = vector.load %arg2[%c0_5, %c0_6] : memref<1x32xf32, #tpu.memory_space<vmem>>, vector<1x32xf32>
    %18 = vector.broadcast %17 : vector<1x32xf32> to vector<16x32xf32>
    %19 = arith.mulf %16, %18 : vector<16x32xf32>
    %c0_7 = arith.constant 0 : index
    %c0_8 = arith.constant 0 : index
    %20 = vector.load %arg3[%c0_7, %c0_8] : memref<1x32xf32, #tpu.memory_space<vmem>>, vector<1x32xf32>
    %21 = vector.broadcast %20 : vector<1x32xf32> to vector<16x32xf32>
    %22 = arith.addf %19, %21 : vector<16x32xf32>
    %23 = arith.truncf %22 : vector<16x32xf32> to vector<16x32xbf16>
    %c0_9 = arith.constant 0 : index
    %c0_10 = arith.constant 0 : index
    %24 = vector.load %arg4[%c0_9, %c0_10] : memref<16x32xbf16, #tpu.memory_space<vmem>>, vector<16x32xbf16>
    tpu.vector_store %arg4[%c0_9, %c0_10], %23 {strides = array<i32>} : memref<16x32xbf16, #tpu.memory_space<vmem>>, vector<16x32xbf16>,
    return
  }
  func.func @transform_0(%arg0: i32) -> (i32, i32) {
    %c0_i32 = arith.constant 0 : i32
    %c0_i32_0 = arith.constant 0 : i32
    return %arg0, %c0_i32 : i32, i32
  }
  func.func @transform_1(%arg0: i32) -> (i32, i32) {
    %c0_i32 = arith.constant 0 : i32
    %c0_i32_0 = arith.constant 0 : i32
    %c0_i32_1 = arith.constant 0 : i32
    return %c0_i32, %c0_i32_0 : i32, i32
  }
  func.func @transform_2(%arg0: i32) -> (i32, i32) {
    %c0_i32 = arith.constant 0 : i32
    %c0_i32_0 = arith.constant 0 : i32
    %c0_i32_1 = arith.constant 0 : i32
    return %c0_i32, %c0_i32_0 : i32, i32
  }
  func.func @transform_3(%arg0: i32) -> (i32, i32) {
    %c0_i32 = arith.constant 0 : i32
    %c0_i32_0 = arith.constant 0 : i32
    return %arg0, %c0_i32 : i32, i32
  }
}

module attributes {stable_mosaic.version = 11 : i64} {
  func.func @_out_proj_ln_kernel(%arg0: i32, %arg1: memref<16x32xbf16, #tpu.memory_space<vmem>>, %arg2: memref<32x32xbf16, #tpu.memory_space<vmem>>, %arg3: memref<1x32xf32, #tpu.memory_space<vmem>>, %arg4: memref<16x32xbf16, #tpu.memory_space<vmem>>, %arg5: memref<1x32xf32, #tpu.memory_space<vmem>>, %arg6: memref<1x32xf32, #tpu.memory_space<vmem>>, %arg7: memref<16x32xbf16, #tpu.memory_space<vmem>>) attributes {dimension_semantics = [#tpu.dimension_semantics<parallel>], iteration_bounds = array<i64: 1>, scalar_prefetch = 0 : i64, scratch_operands = 0 : i64, tpu.core_type = #tpu.core_type<tc>, window_params = [{transform_indices = @transform_0, window_bounds = array<i64: 16, 32>}, {pipeline_mode = #tpu.pipeline_mode<synchronous>, transform_indices = @transform_1, window_bounds = array<i64: 32, 32>}, {pipeline_mode = #tpu.pipeline_mode<synchronous>, transform_indices = @transform_2, window_bounds = array<i64: 1, 32>}, {transform_indices = @transform_3, window_bounds = array<i64: 16, 32>}, {pipeline_mode = #tpu.pipeline_mode<synchronous>, transform_indices = @transform_4, window_bounds = array<i64: 1, 32>}, {pipeline_mode = #tpu.pipeline_mode<synchronous>, transform_indices = @transform_5, window_bounds = array<i64: 1, 32>}, {transform_indices = @transform_6, window_bounds = array<i64: 16, 32>}]} {
    %c0 = arith.constant 0 : index
    %c0_0 = arith.constant 0 : index
    %0 = vector.load %arg1[%c0, %c0_0] : memref<16x32xbf16, #tpu.memory_space<vmem>>, vector<16x32xbf16>
    %c0_1 = arith.constant 0 : index
    %c0_2 = arith.constant 0 : index
    %1 = vector.load %arg2[%c0_1, %c0_2] : memref<32x32xbf16, #tpu.memory_space<vmem>>, vector<32x32xbf16>
    %cst = arith.constant dense<0.000000e+00> : vector<16x32xf32>
    %2 = tpu.matmul %0, %1, %cst {dimension_numbers = #tpu.dot_dimension_numbers<[1], [0], [0], [1], [0, 0, 1, 1], [], []>} : vector<16x32xbf16>, vector<32x32xbf16>, vector<16x32xf32> -> vector<16x32xf32>
    %c0_3 = arith.constant 0 : index
    %c0_4 = arith.constant 0 : index
    %3 = vector.load %arg3[%c0_3, %c0_4] : memref<1x32xf32, #tpu.memory_space<vmem>>, vector<1x32xf32>
    %4 = vector.broadcast %3 : vector<1x32xf32> to vector<16x32xf32>
    %5 = arith.addf %2, %4 : vector<16x32xf32>
    %c0_5 = arith.constant 0 : index
    %c0_6 = arith.constant 0 : index
    %6 = vector.load %arg4[%c0_5, %c0_6] : memref<16x32xbf16, #tpu.memory_space<vmem>>, vector<16x32xbf16>
    %7 = arith.extf %6 : vector<16x32xbf16> to vector<16x32xf32>
    %8 = arith.addf %5, %7 : vector<16x32xf32>
    %cst_7 = arith.constant dense<0.000000e+00> : vector<16xf32>
    %9 = vector.multi_reduction <add>, %8, %cst_7 [1] : vector<16x32xf32> to vector<16xf32>
    %10 = vector.shape_cast %9 : vector<16xf32> to vector<16x1xf32>
    %cst_8 = arith.constant 3.200000e+01 : f32
    %11 = vector.broadcast %cst_8 : f32 to vector<16x1xf32>
    %12 = arith.divf %10, %11 : vector<16x1xf32>
    %13 = vector.broadcast %12 : vector<16x1xf32> to vector<16x32xf32>
    %14 = arith.subf %8, %13 : vector<16x32xf32>
    %15 = arith.mulf %14, %14 : vector<16x32xf32>
    %cst_9 = arith.constant dense<0.000000e+00> : vector<16xf32>
    %16 = vector.multi_reduction <add>, %15, %cst_9 [1] : vector<16x32xf32> to vector<16xf32>
    %17 = vector.shape_cast %16 : vector<16xf32> to vector<16x1xf32>
    %cst_10 = arith.constant 3.200000e+01 : f32
    %18 = vector.broadcast %cst_10 : f32 to vector<16x1xf32>
    %19 = arith.divf %17, %18 : vector<16x1xf32>
    %cst_11 = arith.constant 9.99999996E-13 : f32
    %20 = vector.broadcast %cst_11 : f32 to vector<16x1xf32>
    %21 = arith.addf %19, %20 : vector<16x1xf32>
    %22 = math.rsqrt %21 : vector<16x1xf32>
    %23 = vector.broadcast %22 : vector<16x1xf32> to vector<16x32xf32>
    %24 = arith.mulf %14, %23 : vector<16x32xf32>
    %c0_12 = arith.constant 0 : index
    %c0_13 = arith.constant 0 : index
    %25 = vector.load %arg5[%c0_12, %c0_13] : memref<1x32xf32, #tpu.memory_space<vmem>>, vector<1x32xf32>
    %26 = vector.broadcast %25 : vector<1x32xf32> to vector<16x32xf32>
    %27 = arith.mulf %24, %26 : vector<16x32xf32>
    %c0_14 = arith.constant 0 : index
    %c0_15 = arith.constant 0 : index
    %28 = vector.load %arg6[%c0_14, %c0_15] : memref<1x32xf32, #tpu.memory_space<vmem>>, vector<1x32xf32>
    %29 = vector.broadcast %28 : vector<1x32xf32> to vector<16x32xf32>
    %30 = arith.addf %27, %29 : vector<16x32xf32>
    %31 = arith.truncf %30 : vector<16x32xf32> to vector<16x32xbf16>
    %c0_16 = arith.constant 0 : index
    %c0_17 = arith.constant 0 : index
    %32 = vector.load %arg7[%c0_16, %c0_17] : memref<16x32xbf16, #tpu.memory_space<vmem>>, vector<16x32xbf16>
    tpu.vector_store %arg7[%c0_16, %c0_17], %31 {strides = array<i32>} : memref<16x32xbf16, #tpu.memory_space<vmem>>, vector<16x32xbf16>,
    return
  }
  func.func @transform_0(%arg0: i32) -> (i32, i32) {
    %c0_i32 = arith.constant 0 : i32
    %c0_i32_0 = arith.constant 0 : i32
    return %arg0, %c0_i32 : i32, i32
  }
  func.func @transform_1(%arg0: i32) -> (i32, i32) {
    %c0_i32 = arith.constant 0 : i32
    %c0_i32_0 = arith.constant 0 : i32
    %c0_i32_1 = arith.constant 0 : i32
    return %c0_i32, %c0_i32_0 : i32, i32
  }
  func.func @transform_2(%arg0: i32) -> (i32, i32) {
    %c0_i32 = arith.constant 0 : i32
    %c0_i32_0 = arith.constant 0 : i32
    %c0_i32_1 = arith.constant 0 : i32
    return %c0_i32, %c0_i32_0 : i32, i32
  }
  func.func @transform_3(%arg0: i32) -> (i32, i32) {
    %c0_i32 = arith.constant 0 : i32
    %c0_i32_0 = arith.constant 0 : i32
    return %arg0, %c0_i32 : i32, i32
  }
  func.func @transform_4(%arg0: i32) -> (i32, i32) {
    %c0_i32 = arith.constant 0 : i32
    %c0_i32_0 = arith.constant 0 : i32
    %c0_i32_1 = arith.constant 0 : i32
    return %c0_i32, %c0_i32_0 : i32, i32
  }
  func.func @transform_5(%arg0: i32) -> (i32, i32) {
    %c0_i32 = arith.constant 0 : i32
    %c0_i32_0 = arith.constant 0 : i32
    %c0_i32_1 = arith.constant 0 : i32
    return %c0_i32, %c0_i32_0 : i32, i32
  }
  func.func @transform_6(%arg0: i32) -> (i32, i32) {
    %c0_i32 = arith.constant 0 : i32
    %c0_i32_0 = arith.constant 0 : i32
    return %arg0, %c0_i32 : i32, i32
  }
}

module attributes {stable_mosaic.version = 11 : i64} {
  func.func @_ffn_ln_kernel(%arg0: i32, %arg1: memref<16x32xbf16, #tpu.memory_space<vmem>>, %arg2: memref<32x64xbf16, #tpu.memory_space<vmem>>, %arg3: memref<1x64xf32, #tpu.memory_space<vmem>>, %arg4: memref<64x32xbf16, #tpu.memory_space<vmem>>, %arg5: memref<1x32xf32, #tpu.memory_space<vmem>>, %arg6: memref<1x32xf32, #tpu.memory_space<vmem>>, %arg7: memref<1x32xf32, #tpu.memory_space<vmem>>, %arg8: memref<16x32xbf16, #tpu.memory_space<vmem>>) attributes {dimension_semantics = [#tpu.dimension_semantics<parallel>], iteration_bounds = array<i64: 1>, scalar_prefetch = 0 : i64, scratch_operands = 0 : i64, tpu.core_type = #tpu.core_type<tc>, window_params = [{transform_indices = @transform_0, window_bounds = array<i64: 16, 32>}, {pipeline_mode = #tpu.pipeline_mode<synchronous>, transform_indices = @transform_1, window_bounds = array<i64: 32, 64>}, {pipeline_mode = #tpu.pipeline_mode<synchronous>, transform_indices = @transform_2, window_bounds = array<i64: 1, 64>}, {pipeline_mode = #tpu.pipeline_mode<synchronous>, transform_indices = @transform_3, window_bounds = array<i64: 64, 32>}, {pipeline_mode = #tpu.pipeline_mode<synchronous>, transform_indices = @transform_4, window_bounds = array<i64: 1, 32>}, {pipeline_mode = #tpu.pipeline_mode<synchronous>, transform_indices = @transform_5, window_bounds = array<i64: 1, 32>}, {pipeline_mode = #tpu.pipeline_mode<synchronous>, transform_indices = @transform_6, window_bounds = array<i64: 1, 32>}, {transform_indices = @transform_7, window_bounds = array<i64: 16, 32>}]} {
    %c0 = arith.constant 0 : index
    %c0_0 = arith.constant 0 : index
    %0 = vector.load %arg1[%c0, %c0_0] : memref<16x32xbf16, #tpu.memory_space<vmem>>, vector<16x32xbf16>
    %c0_1 = arith.constant 0 : index
    %c0_2 = arith.constant 0 : index
    %1 = vector.load %arg2[%c0_1, %c0_2] : memref<32x64xbf16, #tpu.memory_space<vmem>>, vector<32x64xbf16>
    %cst = arith.constant dense<0.000000e+00> : vector<16x64xf32>
    %2 = tpu.matmul %0, %1, %cst {dimension_numbers = #tpu.dot_dimension_numbers<[1], [0], [0], [1], [0, 0, 1, 1], [], []>} : vector<16x32xbf16>, vector<32x64xbf16>, vector<16x64xf32> -> vector<16x64xf32>
    %c0_3 = arith.constant 0 : index
    %c0_4 = arith.constant 0 : index
    %3 = vector.load %arg3[%c0_3, %c0_4] : memref<1x64xf32, #tpu.memory_space<vmem>>, vector<1x64xf32>
    %4 = vector.broadcast %3 : vector<1x64xf32> to vector<16x64xf32>
    %5 = arith.addf %2, %4 : vector<16x64xf32>
    %6 = arith.mulf %5, %5 : vector<16x64xf32>
    %7 = arith.mulf %5, %6 : vector<16x64xf32>
    %cst_5 = arith.constant 4.471500e-02 : f32
    %8 = vector.broadcast %cst_5 : f32 to vector<16x64xf32>
    %9 = arith.mulf %8, %7 : vector<16x64xf32>
    %10 = arith.addf %5, %9 : vector<16x64xf32>
    %cst_6 = arith.constant 0.797884583 : f32
    %11 = vector.broadcast %cst_6 : f32 to vector<16x64xf32>
    %12 = arith.mulf %11, %10 : vector<16x64xf32>
    %13 = math.tanh %12 : vector<16x64xf32>
    %cst_7 = arith.constant 1.000000e+00 : f32
    %14 = vector.broadcast %cst_7 : f32 to vector<16x64xf32>
    %15 = arith.addf %14, %13 : vector<16x64xf32>
    %cst_8 = arith.constant 5.000000e-01 : f32
    %16 = vector.broadcast %cst_8 : f32 to vector<16x64xf32>
    %17 = arith.mulf %16, %15 : vector<16x64xf32>
    %18 = arith.mulf %5, %17 : vector<16x64xf32>
    %19 = arith.truncf %18 : vector<16x64xf32> to vector<16x64xbf16>
    %c0_9 = arith.constant 0 : index
    %c0_10 = arith.constant 0 : index
    %20 = vector.load %arg4[%c0_9, %c0_10] : memref<64x32xbf16, #tpu.memory_space<vmem>>, vector<64x32xbf16>
    %cst_11 = arith.constant dense<0.000000e+00> : vector<16x32xf32>
    %21 = tpu.matmul %19, %20, %cst_11 {dimension_numbers = #tpu.dot_dimension_numbers<[1], [0], [0], [1], [0, 0, 1, 1], [], []>} : vector<16x64xbf16>, vector<64x32xbf16>, vector<16x32xf32> -> vector<16x32xf32>
    %c0_12 = arith.constant 0 : index
    %c0_13 = arith.constant 0 : index
    %22 = vector.load %arg5[%c0_12, %c0_13] : memref<1x32xf32, #tpu.memory_space<vmem>>, vector<1x32xf32>
    %23 = vector.broadcast %22 : vector<1x32xf32> to vector<16x32xf32>
    %24 = arith.addf %21, %23 : vector<16x32xf32>
    %25 = arith.extf %0 : vector<16x32xbf16> to vector<16x32xf32>
    %26 = arith.addf %24, %25 : vector<16x32xf32>
    %cst_14 = arith.constant dense<0.000000e+00> : vector<16xf32>
    %27 = vector.multi_reduction <add>, %26, %cst_14 [1] : vector<16x32xf32> to vector<16xf32>
    %28 = vector.shape_cast %27 : vector<16xf32> to vector<16x1xf32>
    %cst_15 = arith.constant 3.200000e+01 : f32
    %29 = vector.broadcast %cst_15 : f32 to vector<16x1xf32>
    %30 = arith.divf %28, %29 : vector<16x1xf32>
    %31 = vector.broadcast %30 : vector<16x1xf32> to vector<16x32xf32>
    %32 = arith.subf %26, %31 : vector<16x32xf32>
    %33 = arith.mulf %32, %32 : vector<16x32xf32>
    %cst_16 = arith.constant dense<0.000000e+00> : vector<16xf32>
    %34 = vector.multi_reduction <add>, %33, %cst_16 [1] : vector<16x32xf32> to vector<16xf32>
    %35 = vector.shape_cast %34 : vector<16xf32> to vector<16x1xf32>
    %cst_17 = arith.constant 3.200000e+01 : f32
    %36 = vector.broadcast %cst_17 : f32 to vector<16x1xf32>
    %37 = arith.divf %35, %36 : vector<16x1xf32>
    %cst_18 = arith.constant 9.99999996E-13 : f32
    %38 = vector.broadcast %cst_18 : f32 to vector<16x1xf32>
    %39 = arith.addf %37, %38 : vector<16x1xf32>
    %40 = math.rsqrt %39 : vector<16x1xf32>
    %41 = vector.broadcast %40 : vector<16x1xf32> to vector<16x32xf32>
    %42 = arith.mulf %32, %41 : vector<16x32xf32>
    %c0_19 = arith.constant 0 : index
    %c0_20 = arith.constant 0 : index
    %43 = vector.load %arg6[%c0_19, %c0_20] : memref<1x32xf32, #tpu.memory_space<vmem>>, vector<1x32xf32>
    %44 = vector.broadcast %43 : vector<1x32xf32> to vector<16x32xf32>
    %45 = arith.mulf %42, %44 : vector<16x32xf32>
    %c0_21 = arith.constant 0 : index
    %c0_22 = arith.constant 0 : index
    %46 = vector.load %arg7[%c0_21, %c0_22] : memref<1x32xf32, #tpu.memory_space<vmem>>, vector<1x32xf32>
    %47 = vector.broadcast %46 : vector<1x32xf32> to vector<16x32xf32>
    %48 = arith.addf %45, %47 : vector<16x32xf32>
    %49 = arith.truncf %48 : vector<16x32xf32> to vector<16x32xbf16>
    %c0_23 = arith.constant 0 : index
    %c0_24 = arith.constant 0 : index
    %50 = vector.load %arg8[%c0_23, %c0_24] : memref<16x32xbf16, #tpu.memory_space<vmem>>, vector<16x32xbf16>
    tpu.vector_store %arg8[%c0_23, %c0_24], %49 {strides = array<i32>} : memref<16x32xbf16, #tpu.memory_space<vmem>>, vector<16x32xbf16>,
    return
  }
  func.func @transform_0(%arg0: i32) -> (i32, i32) {
    %c0_i32 = arith.constant 0 : i32
    %c0_i32_0 = arith.constant 0 : i32
    return %arg0, %c0_i32 : i32, i32
  }
  func.func @transform_1(%arg0: i32) -> (i32, i32) {
    %c0_i32 = arith.constant 0 : i32
    %c0_i32_0 = arith.constant 0 : i32
    %c0_i32_1 = arith.constant 0 : i32
    return %c0_i32, %c0_i32_0 : i32, i32
  }
  func.func @transform_2(%arg0: i32) -> (i32, i32) {
    %c0_i32 = arith.constant 0 : i32
    %c0_i32_0 = arith.constant 0 : i32
    %c0_i32_1 = arith.constant 0 : i32
    return %c0_i32, %c0_i32_0 : i32, i32
  }
  func.func @transform_3(%arg0: i32) -> (i32, i32) {
    %c0_i32 = arith.constant 0 : i32
    %c0_i32_0 = arith.constant 0 : i32
    %c0_i32_1 = arith.constant 0 : i32
    return %c0_i32, %c0_i32_0 : i32, i32
  }
  func.func @transform_4(%arg0: i32) -> (i32, i32) {
    %c0_i32 = arith.constant 0 : i32
    %c0_i32_0 = arith.constant 0 : i32
    %c0_i32_1 = arith.constant 0 : i32
    return %c0_i32, %c0_i32_0 : i32, i32
  }
  func.func @transform_5(%arg0: i32) -> (i32, i32) {
    %c0_i32 = arith.constant 0 : i32
    %c0_i32_0 = arith.constant 0 : i32
    %c0_i32_1 = arith.constant 0 : i32
    return %c0_i32, %c0_i32_0 : i32, i32
  }
  func.func @transform_6(%arg0: i32) -> (i32, i32) {
    %c0_i32 = arith.constant 0 : i32
    %c0_i32_0 = arith.constant 0 : i32
    %c0_i32_1 = arith.constant 0 : i32
    return %c0_i32, %c0_i32_0 : i32, i32
  }
  func.func @transform_7(%arg0: i32) -> (i32, i32) {
    %c0_i32 = arith.constant 0 : i32
    %c0_i32_0 = arith.constant 0 : i32
    return %arg0, %c0_i32 : i32, i32
  }
}

</mosaic_0001>

<bundles_post_ra>
// kernel: sentences_vec_forward.9
= control target key start
LH: loop header
LB: loop body
LE: loop exit
PB: predicated region body
PF: predicated region fallthrough
CT: control target
= control target key end

     0   :  { %vm16_vm0 = vcmask 261120   ;;  %vm70_vm1 = vcmask 257024   ;;  %s129_s0 = inlined_call_operand.vmem [shape: f32[16,32], index: 0, kind: input, shape index: {}]   ;;  %s130_s1 = inlined_call_operand.vmem [shape: f32[1,32], index: 1, kind: input, shape index: {}]   ;;  %s131_s2 = inlined_call_operand.vmem [shape: f32[1,32], index: 2, kind: input, shape index: {}]   ;;  %s132_s3 = inlined_call_operand.vmem [shape: bf16[16,32], index: 3, kind: output, shape index: {}]  }
   0x1   :  { %v14_v0 = vld [vmem:[%s129_s0] sm:$0xff]  ;;  %v15_v1 = vld [vmem:[%s129_s0 + $0x8] sm:$0xff] }
   0x2   :  { %v17_v2 = vsel %vm16_vm0, %v14_v0, 0.0  ;;  %v20_v3 = vsel %vm16_vm0, %v15_v1, 0.0  ;;  %v77_v21 = vld [vmem:[%s130_s1] ss:$0 sm:$0xff] }
   0x3   :  { %18 = vadd.xlane.f32.xlu0 %v17_v2  ;;  %v78_v23 = vld [vmem:[%s131_s2] ss:$0 sm:$0xff] }
   0x7   :  { %21 = vadd.xlane.f32.xlu0 %v20_v3 }
  0x90   :  { %v19_v4 = vpop.xlane.xlu0 %18 }
  0x91   :  { %v24_v5 = vmul.f32 0.03125, %v19_v4 }
  0x93   :  { %v26_v6 = vsub.f32 %v14_v0, %v24_v5 }
  0x94   :  { %v22_v7 = vpop.xlane.xlu0 %21 }
  0x95   :  { %v25_v8 = vmul.f32 0.03125, %v22_v7  ;;  %v28_v9 = vmul.f32 %v26_v6, %v26_v6 }
  0x97   :  { %v27_v10 = vsub.f32 %v15_v1, %v25_v8  ;;  %v30_v11 = vsel %vm16_vm0, %v28_v9, 0.0 }
  0x98   :  { %31 = vadd.xlane.f32.xlu1 %v30_v11 }
  0x99   :  { %v29_v12 = vmul.f32 %v27_v10, %v27_v10 }
  0x9b   :  { %v33_v13 = vsel %vm16_vm0, %v29_v12, 0.0 }
  0x9c   :  { %34 = vadd.xlane.f32.xlu1 %v33_v13 }
 0x125   :  { %v32_v14 = vpop.xlane.xlu1 %31 }
 0x126   :  { %v36_v15 = vmul.f32 0.03125, %v32_v14 }
 0x128   :  { %v38_v16 = vadd.f32 1e-12, %v36_v15 }
 0x129   :  { %v35_v17 = vpop.xlane.xlu1 %34 }
 0x12a   :  { %83 = vrsqrt.f32 %v38_v16  ;;  %v37_v18 = vmul.f32 0.03125, %v35_v17 }
 0x12c   :  { %v39_v19 = vadd.f32 1e-12, %v37_v18 }
 0x12e   :  { %85 = vrsqrt.f32 %v39_v19 }
 0x134   :  { %v84_v20 = vpop.eup %83 }
 0x135   :  { %v42_v22 = vmul.f32 %v84_v20, %v26_v6 }
 0x137   :  { %v51_v24 = vmul.f32 %v77_v21, %v42_v22 }
 0x138   :  { %v86_v25 = vpop.eup %85 }
 0x139   :  { %v60_v26 = vadd.f32 %v78_v23, %v51_v24  ;;  %v43_v27 = vmul.f32 %v86_v25, %v27_v10 }
 0x13b   :  { %v81_v28 = vpack.c.bf16 %v60_v26, %v60_v26  ;;  %v52_v29 = vmul.f32 %v77_v21, %v43_v27 }
 0x13d   :  { %71 = vst.msk [vmem:[%s132_s3] sm:$0xf] %vm70_vm1, %v81_v28  ;;  %v61_v30 = vadd.f32 %v78_v23, %v52_v29 }
 0x13f   :  { %v82_v31 = vpack.c.bf16 %v61_v30, %v61_v30 }
 0x141   :  { %72 = vst.msk [vmem:[%s132_s3 + $0x4] sm:$0xf] %vm70_vm1, %v82_v31 }

// kernel: sentences_vec_forward.12
= control target key start
LH: loop header
LB: loop body
LE: loop exit
PB: predicated region body
PF: predicated region fallthrough
CT: control target
= control target key end

     0   :  { %v200_v0 = vmov 0.0   ;;  %vm201_vm0 = vmmov 0   ;;  %vm54_vm1 = vcmask 261120   ;;  %vm158_vm2 = vcmask 257024   ;;  %s269_s1 = inlined_call_operand.vmem [shape: bf16[32,32], index: 1, kind: input, shape index: {}]   ;;  %s270_s0 = inlined_call_operand.vmem [shape: bf16[16,32], index: 0, kind: input, shape index: {}]   ;;  %s271_s3 = inlined_call_operand.vmem [shape: bf16[16,32], index: 3, kind: input, shape index: {}]   ;;  %s272_s2 = inlined_call_operand.vmem [shape: f32[1,32], index: 2, kind: input, shape index: {}]   ;;  %s273_s4 = inlined_call_operand.vmem [shape: f32[1,32], index: 4, kind: input, shape index: {}]   ;;  %s274_s5 = inlined_call_operand.vmem [shape: f32[1,32], index: 5, kind: input, shape index: {}]   ;;  %s275_s6 = inlined_call_operand.vmem [shape: bf16[16,32], index: 6, kind: output, shape index: {}]  }
   0x1   :  { %183 = vmatprep.subr.bf16.mxu0 %v200_v0  ;;  %v193_v1 = vld [vmem:[%s269_s1] sm:$0xff]   ;;  %187 = vmatprep.mubr.msk.bf16.mxu0 %vm201_vm0, %v200_v0  ;;  %v194_v2 = vld [vmem:[%s269_s1 + $0x8] sm:$0xff]  }
   0x2   :  { %184 = vmatpush3.bf16.msra.mxu0 %v193_v1  ;;  %v195_v3 = vld [vmem:[%s270_s0] sm:$0xff]  }
   0x3   :  { %185 = vmatprep.subr.bf16.mxu0 %v200_v0  ;;  %v177_v4 = vld [vmem:[%s271_s3] sm:$0xff]  }
   0x4   :  { %v165_v5 = vld [vmem:[%s272_s2] ss:$0 sm:$0xff]  ;;  %v178_v6 = vunpack.c.l.bf16 %v177_v4  ;;  %v179_v10 = vunpack.c.h.bf16 %v177_v4 }
   0x5   :  { %v170_v35 = vld [vmem:[%s273_s4] ss:$0 sm:$0xff] }
   0x6   :  { %186 = vmatpush3.bf16.msra.mxu0 %v194_v2  ;;  %v171_v37 = vld [vmem:[%s274_s5] ss:$0 sm:$0xff] }
   0x9   :  { %188 = vmatmul.mubr.msk.bf16.vlgmr.msra.gmra.mrb[0].mxu0 %vm54_vm1, %v195_v3 }
  0xdc   :  { %v92_v7 = vpop.f32.mrb[0].mxu0 }
  0xdd   :  { %v93_v8 = vadd.f32 %v165_v5, %v92_v7  ;;  %v189_v9 = vpop.f32.mrb[1].mxu0 }
  0xde   :  { %v95_v11 = vpop.f32.mrb[2].mxu0 }
  0xdf   :  { %v96_v12 = vadd.f32 %v165_v5, %v95_v11  ;;  %v190_v13 = vpop.f32.mrb[3].mxu0  ;;  %v103_v14 = vadd.f32 %v178_v6, %v93_v8 }
  0xe1   :  { %v105_v15 = vsel %vm54_vm1, %v103_v14, 0.0  ;;  %v104_v16 = vadd.f32 %v179_v10, %v96_v12 }
  0xe2   :  { %106 = vadd.xlane.f32.xlu0 %v105_v15 }
  0xe3   :  { %v108_v17 = vsel %vm54_vm1, %v104_v16, 0.0 }
  0xe6   :  { %109 = vadd.xlane.f32.xlu0 %v108_v17 }
 0x16f   :  { %v107_v18 = vpop.xlane.xlu0 %106 }
 0x170   :  { %v112_v19 = vmul.f32 0.03125, %v107_v18 }
 0x172   :  { %v114_v20 = vsub.f32 %v103_v14, %v112_v19 }
 0x173   :  { %v110_v21 = vpop.xlane.xlu0 %109 }
 0x174   :  { %v113_v22 = vmul.f32 0.03125, %v110_v21  ;;  %v116_v23 = vmul.f32 %v114_v20, %v114_v20 }
 0x176   :  { %v115_v24 = vsub.f32 %v104_v16, %v113_v22  ;;  %v118_v25 = vsel %vm54_vm1, %v116_v23, 0.0 }
 0x177   :  { %119 = vadd.xlane.f32.xlu1 %v118_v25 }
 0x178   :  { %v117_v26 = vmul.f32 %v115_v24, %v115_v24 }
 0x17a   :  { %v121_v27 = vsel %vm54_vm1, %v117_v26, 0.0 }
 0x17b   :  { %122 = vadd.xlane.f32.xlu1 %v121_v27 }
 0x204   :  { %v120_v28 = vpop.xlane.xlu1 %119 }
 0x205   :  { %v124_v29 = vmul.f32 0.03125, %v120_v28 }
 0x207   :  { %v126_v30 = vadd.f32 1e-12, %v124_v29 }
 0x208   :  { %v123_v31 = vpop.xlane.xlu1 %122 }
 0x209   :  { %196 = vrsqrt.f32 %v126_v30  ;;  %v125_v32 = vmul.f32 0.03125, %v123_v31 }
 0x20b   :  { %v127_v33 = vadd.f32 1e-12, %v125_v32 }
 0x20d   :  { %198 = vrsqrt.f32 %v127_v33 }
 0x213   :  { %v197_v34 = vpop.eup %196 }
 0x214   :  { %v130_v36 = vmul.f32 %v197_v34, %v114_v20 }
 0x216   :  { %v139_v38 = vmul.f32 %v170_v35, %v130_v36 }
 0x217   :  { %v199_v39 = vpop.eup %198 }
 0x218   :  { %v148_v40 = vadd.f32 %v171_v37, %v139_v38  ;;  %v131_v41 = vmul.f32 %v199_v39, %v115_v24 }
 0x21a   :  { %v174_v42 = vpack.c.bf16 %v148_v40, %v148_v40  ;;  %v140_v43 = vmul.f32 %v170_v35, %v131_v41 }
 0x21c   :  { %159 = vst.msk [vmem:[%s275_s6] sm:$0xf] %vm158_vm2, %v174_v42  ;;  %v149_v44 = vadd.f32 %v171_v37, %v140_v43 }
 0x21e   :  { %v175_v45 = vpack.c.bf16 %v149_v44, %v149_v44 }
 0x220   :  { %160 = vst.msk [vmem:[%s275_s6 + $0x4] sm:$0xf] %vm158_vm2, %v175_v45 }

// kernel: sentences_vec_forward.10
= control target key start
LH: loop header
LB: loop body
LE: loop exit
PB: predicated region body
PF: predicated region fallthrough
CT: control target
= control target key end

     0   :  { %v345_v0 = vmov 0.0   ;;  %vm346_vm0 = vmmov 0   ;;  %vm60_vm1 = vcmask 261120   ;;  %vm243_vm2 = vcmask 257024   ;;  %s454_s1 = inlined_call_operand.vmem [shape: bf16[32,32], index: 1, kind: input, shape index: {}]   ;;  %s455_s2 = inlined_call_operand.vmem [shape: bf16[32,32], index: 2, kind: input, shape index: {}]   ;;  %s456_s0 = inlined_call_operand.vmem [shape: bf16[16,32], index: 0, kind: input, shape index: {}]   ;;  %s457_s3 = inlined_call_operand.vmem [shape: bf16[32,32], index: 3, kind: input, shape index: {}]   ;;  %s458_s4 = inlined_call_operand.vmem [shape: f32[1,32], index: 4, kind: input, shape index: {}]   ;;  %s459_s5 = inlined_call_operand.vmem [shape: f32[1,32], index: 5, kind: input, shape index: {}]   ;;  %s460_s6 = inlined_call_operand.vmem [shape: f32[1,32], index: 6, kind: input, shape index: {}]   ;;  %s461_s7 = inlined_call_operand.vmem [shape: bf16[16,32], index: 7, kind: output, shape index: {0}]   ;;  %s462_s8 = inlined_call_operand.vmem [shape: bf16[16,32], index: 8, kind: output, shape index: {1}]   ;;  %s463_s9 = inlined_call_operand.vmem [shape: bf16[16,32], index: 9, kind: output, shape index: {2}]  }
   0x1   :  { %312 = vmatprep.subr.bf16.mxu0 %v345_v0  ;;  %v338_v1 = vld [vmem:[%s454_s1] sm:$0xff]   ;;  %320 = vmatprep.subr.bf16.mxu1 %v345_v0  ;;  %v339_v2 = vld [vmem:[%s454_s1 + $0x8] sm:$0xff]  }
   0x2   :  { %316 = vmatprep.mubr.msk.bf16.mxu0 %vm346_vm0, %v345_v0  ;;  %324 = vmatprep.mubr.msk.bf16.mxu1 %vm346_vm0, %v345_v0  ;;  %v340_v3 = vld [vmem:[%s455_s2] sm:$0xff]   ;;  %v343_v5 = vld [vmem:[%s455_s2 + $0x8] sm:$0xff]  }
   0x3   :  { %313 = vmatpush3.bf16.msra.mxu0 %v338_v1  ;;  %321 = vmatpush3.bf16.msra.mxu1 %v340_v3  ;;  %v341_v4 = vld [vmem:[%s456_s0] sm:$0xff]   ;;  %v344_v7 = vld [vmem:[%s457_s3 + $0x8] sm:$0xff]  }
   0x4   :  { %314 = vmatprep.subr.bf16.mxu0 %v345_v0  ;;  %322 = vmatprep.subr.bf16.mxu1 %v345_v0  ;;  %v342_v6 = vld [vmem:[%s457_s3] sm:$0xff]  }
   0x5   :  { %v278_v8 = vld [vmem:[%s458_s4] ss:$0 sm:$0xff] }
   0x6   :  { %v283_v10 = vld [vmem:[%s459_s5] ss:$0 sm:$0xff] }
   0x7   :  { %315 = vmatpush3.bf16.msra.mxu0 %v339_v2  ;;  %323 = vmatpush3.bf16.msra.mxu1 %v343_v5  ;;  %v287_v26 = vld [vmem:[%s460_s6] ss:$0 sm:$0xff] }
   0x8   :  { %328 = vmatprep.subr.bf16.mxu0 %v345_v0 }
   0xa   :  { %317 = vmatmul.mubr.msk.bf16.vlgmr.msra.gmra.mrb[0].mxu0 %vm60_vm1, %v341_v4  ;;  %325 = vmatmul.mubr.msk.bf16.vlgmr.msra.gmra.mrb[0].mxu1 %vm60_vm1, %v341_v4 }
   0xb   :  { %329 = vmatpush3.bf16.msra.mxu0 %v342_v6  ;;  %332 = vmatprep.mubr.msk.bf16.mxu0 %vm346_vm0, %v345_v0 }
   0xc   :  { %330 = vmatprep.subr.bf16.mxu0 %v345_v0 }
   0xf   :  { %331 = vmatpush3.bf16.msra.mxu0 %v344_v7 }
  0x12   :  { %333 = vmatmul.mubr.msk.bf16.vlgmr.msra.gmra.mrb[4].mxu0 %vm60_vm1, %v341_v4 }
  0xdd   :  { %v98_v9 = vpop.f32.mrb[0].mxu0  ;;  %v162_v14 = vpop.f32.mrb[0].mxu1 }
  0xde   :  { %v99_v11 = vadd.f32 %v278_v8, %v98_v9  ;;  %v318_v12 = vpop.f32.mrb[1].mxu0  ;;  %v163_v18 = vadd.f32 %v283_v10, %v162_v14  ;;  %v326_v19 = vpop.f32.mrb[1].mxu1 }
  0xdf   :  { %v101_v13 = vpop.f32.mrb[2].mxu0  ;;  %v165_v20 = vpop.f32.mrb[2].mxu1 }
  0xe0   :  { %v233_v15 = vmul.f32 0.35355338, %v99_v11  ;;  %v102_v16 = vadd.f32 %v278_v8, %v101_v13  ;;  %v319_v17 = vpop.f32.mrb[3].mxu0  ;;  %v299_v23 = vpack.c.bf16 %v163_v18, %v163_v18  ;;  %v166_v24 = vadd.f32 %v283_v10, %v165_v20  ;;  %v327_v25 = vpop.f32.mrb[3].mxu1 }
  0xe2   :  { %v297_v21 = vpack.c.bf16 %v233_v15, %v233_v15  ;;  %v234_v22 = vmul.f32 0.35355338, %v102_v16  ;;  %254 = vst.msk [vmem:[%s462_s8] sm:$0xf] %vm243_vm2, %v299_v23  ;;  %v300_v28 = vpack.c.bf16 %v166_v24, %v166_v24 }
  0xe4   :  { %244 = vst.msk [vmem:[%s461_s7] sm:$0xf] %vm243_vm2, %v297_v21  ;;  %v298_v27 = vpack.c.bf16 %v234_v22, %v234_v22  ;;  %255 = vst.msk [vmem:[%s462_s8 + $0x4] sm:$0xf] %vm243_vm2, %v300_v28 }
  0xe5   :  { %v226_v29 = vpop.f32.mrb[4].mxu0 }
  0xe6   :  { %245 = vst.msk [vmem:[%s461_s7 + $0x4] sm:$0xf] %vm243_vm2, %v298_v27  ;;  %v227_v30 = vadd.f32 %v287_v26, %v226_v29  ;;  %v334_v31 = vpop.f32.mrb[5].mxu0 }
  0xe7   :  { %v229_v32 = vpop.f32.mrb[6].mxu0 }
  0xe8   :  { %v301_v33 = vpack.c.bf16 %v227_v30, %v227_v30  ;;  %v230_v34 = vadd.f32 %v287_v26, %v229_v32  ;;  %v335_v35 = vpop.f32.mrb[7].mxu0 }
  0xea   :  { %264 = vst.msk [vmem:[%s463_s9] sm:$0xf] %vm243_vm2, %v301_v33  ;;  %v302_v36 = vpack.c.bf16 %v230_v34, %v230_v34 }
  0xec   :  { %265 = vst.msk [vmem:[%s463_s9 + $0x4] sm:$0xf] %vm243_vm2, %v302_v36 }

// kernel: sentences_vec_forward.11
= control target key start
LH: loop header
LB: loop body
LE: loop exit
PB: predicated region body
PF: predicated region fallthrough
CT: control target
= control target key end

     0   :  { %s903_s12 = smov 0   ;;  %s998_s0 = inlined_call_operand.vmem [shape: bf16[2,8,32], index: 0, kind: input, shape index: {}]   ;;  %s999_s1 = inlined_call_operand.vmem [shape: bf16[2,8,32], index: 1, kind: input, shape index: {}]   ;;  %s1000_s2 = inlined_call_operand.vmem [shape: bf16[2,8,32], index: 2, kind: input, shape index: {}]   ;;  %s1001_s3 = inlined_call_operand.vmem [shape: bf16[2,8,32], index: 3, kind: output, shape index: {}]  }
   0x1 LB: > { %s746_s13 = sadd.s32 4294967295, %s873_s12   ;;  %p750_p0 = scmp.ge.s32.totalorder %s873_s12, 1  ;;  %s873_s12 = sphi %s903_s12, %s13_s12  }
   0x2   : > { %p154_p1 = scmp.lt.s32.totalorder %s873_s12, 3 }
   0x4   : > { %p155_p2 = pnand %p750_p0, %p154_p1 }
   0x5   : > { %p184_p3 = scmp.lt.s32.totalorder (!%p155_p2), %s746_s13, 1  ;;  %v875_v0 = vmov (!%p155_p2), 0.0   ;;  %vm876_vm0 = vmmov (!%p155_p2), 0   ;;  %vm204_vm1 = vcmask (!%p155_p2), 64512   ;;  %s877_s21 = smov (!%p155_p2), 120   ;;  %vm266_vm2 = vcmask (!%p155_p2), 1043456  }
   0x6   : > { %158 = sbr.rel (%p155_p2) target bundleno = 1473 (0x5c1), region = 32  ;;  %784 = vmatprep.subr.bf16.mxu0 (!%p155_p2), %v875_v0  ;;  %786 = vmatprep.mubr.msk.bf16.mxu0 (!%p155_p2), %vm876_vm0, %v875_v0  ;;  %s878_s22 = smov (!%p155_p2), 112   ;;  %vm662_vm3 = vcmask (!%p155_p2), 130048   ;;  %vm664_vm4 = vcmask (!%p155_p2), 195584   ;;  %vm667_vm5 = vcmask (!%p155_p2), 257024  }
   0x7   : > { %790 = vmatprep.subr.bf16.mxu1 (!%p155_p2), %v875_v0  ;;  %792 = vmatprep.mubr.msk.bf16.mxu1 (!%p155_p2), %vm876_vm0, %v875_v0  ;;  %s879_s23 = smov (!%p155_p2), 104   ;;  %s880_s27 = smov (!%p155_p2), 8  }
   0x8   : > { %s881_s28 = smov (!%p155_p2), 16   ;;  %s882_s29 = smov (!%p155_p2), 24  }
   0xd   : > { %s1003_s13 = smov (!%p184_p3, %s746_s13), 1 }
   0xe   : > { %s917_s14 = sshll.u32 %s1003_s13, 2 }
   0xf   : > { %s191_s17 = scalar_lea.vmem %s999_s1, %s917_s14  ;;  %s187_s20 = scalar_lea.vmem %s998_s0, %s917_s14 }
  0x10   : > { %v202_v1 = vld [vmem:[%s191_s17] sm:$0xf]  ;;  %s195_s26 = scalar_lea.vmem %s1000_s2, %s917_s14  ;;  %s199_s5 = scalar_lea.vmem %s1001_s3, %s917_s14 }
  0x11   : > { %v209_v2 = vsel %vm204_vm1, %v202_v1, 0  ;;  %v201_v3 = vld [vmem:[%s187_s20] sm:$0xf]  ;;  %v758_v9 = vcombine.low %v202_v1, %v202_v1 }
  0x12   : > { %785 = vmatpush3.bf16.xpose.msra.mxu0 %v209_v2  ;;  %v757_v10 = vcombine.low %v201_v3, %v201_v3  ;;  %v943_v16 = vld [vmem:[%s195_s26] sm:$0xf] }
  0x13   : > { %802 = vmatprep.subr.bf16.mxu0 %v875_v0  ;;  %318 = vrot.lane.b32.xlu1 %v758_v9, %s877_s21  ;;  %v268_v17 = vsel %vm266_vm2, %v943_v16, 0  ;;  %v760_v60 = vcombine.low %v943_v16, %v943_v16 }
  0x14   : > { %791 = vmatpush3.bf16.msra.mxu1 %v268_v17 }
  0x15   : > { %796 = vmatprep.subr.bf16.mxu1 %v875_v0 }
  0x17   : > { %313 = vrot.lane.b32.xlu1 %v757_v10, %s877_s21 }
  0x19   : > { %787 = vmatmul.mubr.msk.bf16.vlgmr.msra.gmra.mrb[0].mxu0 %vm204_vm1, %v201_v3 }
  0x1a   : > { %804 = vmatprep.mubr.msk.bf16.mxu0 %vm876_vm0, %v875_v0 }
  0x1b   : > { %429 = vrot.lane.b32.xlu1 %v757_v10, %s878_s22 }
  0x1f   : > { %541 = vrot.lane.b32.xlu1 %v758_v9, %s879_s23 }
  0x23   : > { %539 = vrot.lane.b32.xlu1 %v757_v10, %s879_s23 }
  0x85   : > { %v319_v20 = vpop.permute.xlu1 %318 }
  0x86   : > { %v324_v22 = vsel %vm204_vm1, %v319_v20, 0 }
  0x89   : > { %v314_v24 = vpop.permute.xlu1 %313 }
  0x8d   : > { %v430_v26 = vpop.permute.xlu1 %429 }
  0x91   : > { %v542_v28 = vpop.permute.xlu1 %541 }
  0x92   : > { %v547_v29 = vsel %vm204_vm1, %v542_v28, 0 }
  0x95   : > { %v540_v30 = vpop.permute.xlu1 %539 }
  0xec   : > { %v245_v4 = vpop.f32.mrb[0].mxu0 }
  0xed   : > { %v788_v5 = vpop.f32.mrb[1].mxu0  ;;  %v251_v6 = vsel %vm204_vm1, %v245_v4, -inf }
  0xee   : > { %252 = vmax.xlane.f32.xlu0 %v251_v6  ;;  %v248_v7 = vpop.f32.mrb[2].mxu0 }
  0xef   : > { %v789_v8 = vpop.f32.mrb[3].mxu0 }
 0x17b   : > { %v253_v11 = vpop.xlane.xlu0 %252 }
 0x17c   : > { %v254_v12 = vsub.f32 %v245_v4, %v253_v11 }
 0x17e   : > { %v255_v13 = vmul.f32 1.442695, %v254_v12 }
 0x180   : > { %851 = vpow2.f32 %v255_v13 }
 0x18a   : > { %v852_v14 = vpop.eup %851 }
 0x18b   : > { %v257_v15 = vsel %vm204_vm1, %v852_v14, 0.0 }
 0x18c   : > { %258 = vadd.xlane.f32.xlu0 %v257_v15 }
 0x1a2   : > { %431 = vrot.lane.b32.xlu0 %v758_v9, %s878_s22 }
 0x219   : > { %v259_v18 = vpop.xlane.xlu0 %258 }
 0x21a   : > { %853 = vrcp.f32 %v259_v18 }
 0x21d   : > { %v432_v25 = vpop.permute.xlu0 %431 }
 0x21e   : > { %v437_v27 = vsel %vm204_vm1, %v432_v25, 0 }
 0x224   : > { %v854_v19 = vpop.eup %853 }
 0x225   : > { %v261_v21 = vmul.f32 %v854_v19, %v852_v14 }
 0x227   : > { %v262_v23 = vpack.c.bf16 %v261_v21, %v261_v21 }
 0x229   : > { %793 = vmatmul.mubr.msk.bf16.vlgmr.msra.gmra.mrb[0].mxu1 %vm204_vm1, %v262_v23 }
 0x22a   : > { %797 = vmatpush3.bf16.xpose.msra.mxu1 %v324_v22  ;;  %798 = vmatprep.mubr.msk.bf16.mxu1 %vm876_vm0, %v875_v0 }
 0x22b   : > { %808 = vmatprep.subr.bf16.mxu1 %v875_v0 }
 0x231   : > { %799 = vmatmul.mubr.msk.bf16.vlgmr.msra.gmra.mrb[4].mxu1 %vm204_vm1, %v314_v24 }
 0x232   : > { %809 = vmatpush3.bf16.xpose.msra.mxu1 %v437_v27  ;;  %810 = vmatprep.mubr.msk.bf16.mxu1 %vm876_vm0, %v875_v0 }
 0x233   : > { %820 = vmatprep.subr.bf16.mxu1 %v875_v0 }
 0x239   : > { %811 = vmatmul.mubr.msk.bf16.vlgmr.msra.gmra.mrb[8].mxu1 %vm204_vm1, %v430_v26 }
 0x23a   : > { %821 = vmatpush3.bf16.xpose.msra.mxu1 %v547_v29  ;;  %822 = vmatprep.mubr.msk.bf16.mxu1 %vm876_vm0, %v875_v0 }
 0x241   : > { %823 = vmatmul.mubr.msk.bf16.vlgmr.msra.gmra.mrb[12].mxu1 %vm204_vm1, %v540_v30 }
 0x2fc   : > { %v964_v31 = vpop.f32.mrb[0].mxu1 }
 0x2fd   : > { %v794_v32 = vpop.f32.mrb[1].mxu1 }
 0x2fe   : > { %v307_v33 = vpop.f32.mrb[2].mxu1 }
 0x2ff   : > { %v795_v34 = vpop.f32.mrb[3].mxu1 }
 0x304   : > { %v360_v35 = vpop.f32.mrb[4].mxu1 }
 0x305   : > { %v800_v36 = vpop.f32.mrb[5].mxu1  ;;  %v366_v37 = vsel %vm204_vm1, %v360_v35, -inf }
 0x306   : > { %367 = vmax.xlane.f32.xlu1 %v366_v37  ;;  %v363_v38 = vpop.f32.mrb[6].mxu1 }
 0x307   : > { %v801_v39 = vpop.f32.mrb[7].mxu1 }
 0x30c   : > { %v473_v40 = vpop.f32.mrb[8].mxu1 }
 0x30d   : > { %v479_v41 = vsel %vm204_vm1, %v473_v40, -inf  ;;  %v812_v42 = vpop.f32.mrb[9].mxu1 }
 0x30e   : > { %480 = vmax.xlane.f32.xlu0 %v479_v41  ;;  %v476_v43 = vpop.f32.mrb[10].mxu1 }
 0x30f   : > { %v813_v44 = vpop.f32.mrb[11].mxu1 }
 0x314   : > { %v583_v45 = vpop.f32.mrb[12].mxu1 }
 0x315   : > { %v589_v46 = vsel %vm204_vm1, %v583_v45, -inf  ;;  %v824_v47 = vpop.f32.mrb[13].mxu1 }
 0x316   : > { %590 = vmax.xlane.f32.xlu1 %v589_v46  ;;  %v586_v48 = vpop.f32.mrb[14].mxu1 }
 0x317   : > { %v825_v49 = vpop.f32.mrb[15].mxu1 }
 0x393   : > { %v368_v50 = vpop.xlane.xlu1 %367 }
 0x394   : > { %v369_v51 = vsub.f32 %v360_v35, %v368_v50 }
 0x396   : > { %v370_v52 = vmul.f32 1.442695, %v369_v51 }
 0x398   : > { %855 = vpow2.f32 %v370_v52 }
 0x39b   : > { %v481_v53 = vpop.xlane.xlu0 %480 }
 0x39c   : > { %v482_v54 = vsub.f32 %v473_v40, %v481_v53 }
 0x39e   : > { %v483_v55 = vmul.f32 1.442695, %v482_v54 }
 0x3a0   : > { %857 = vpow2.f32 %v483_v55 }
 0x3a2   : > { %v856_v56 = vpop.eup %855 }
 0x3a3   : > { %v372_v57 = vsel %vm204_vm1, %v856_v56, 0.0  ;;  %v591_v61 = vpop.xlane.xlu1 %590 }
 0x3a4   : > { %373 = vadd.xlane.f32.xlu1 %v372_v57  ;;  %v592_v62 = vsub.f32 %v583_v45, %v591_v61 }
 0x3a6   : > { %v593_v63 = vmul.f32 1.442695, %v592_v62 }
 0x3a8   : > { %859 = vpow2.f32 %v593_v63 }
 0x3aa   : > { %v858_v58 = vpop.eup %857 }
 0x3ab   : > { %v485_v59 = vsel %vm204_vm1, %v858_v58, 0.0 }
 0x3ac   : > { %486 = vadd.xlane.f32.xlu0 %v485_v59 }
 0x3b2   : > { %v860_v1 = vpop.eup %859 }
 0x3b3   : > { %v595_v2 = vsel %vm204_vm1, %v860_v1, 0.0 }
 0x3b5   : > { %491 = vrot.lane.b32.xlu1 %v760_v60, %s878_s22 }
 0x3c2   : > { %381 = vrot.lane.b32.xlu0 %v760_v60, %s877_s21 }
 0x3d9   : > { %596 = vadd.xlane.f32.xlu1 %v595_v2 }
 0x3ea   : > { %601 = vrot.lane.b32.xlu1 %v760_v60, %s879_s23 }
 0x431   : > { %v374_v3 = vpop.xlane.xlu1 %373 }
 0x432   : > { %861 = vrcp.f32 %v374_v3 }
 0x435   : > { %v492_v9 = vpop.permute.xlu1 %491 }
 0x436   : > { %v497_v11 = vsel %vm266_vm2, %v492_v9, 0 }
 0x439   : > { %v487_v4 = vpop.xlane.xlu0 %486 }
 0x43a   : > { %863 = vrcp.f32 %v487_v4 }
 0x43c   : > { %v862_v5 = vpop.eup %861 }
 0x43d   : > { %v376_v6 = vmul.f32 %v862_v5, %v856_v56  ;;  %v382_v7 = vpop.permute.xlu0 %381 }
 0x43e   : > { %v387_v8 = vsel %vm266_vm2, %v382_v7, 0 }
 0x43f   : > { %803 = vmatpush3.bf16.msra.mxu0 %v387_v8  ;;  %v377_v10 = vpack.c.bf16 %v376_v6, %v376_v6 }
 0x440   : > { %814 = vmatprep.subr.bf16.mxu0 %v875_v0 }
 0x442   : > { %805 = vmatmul.mubr.msk.bf16.vlgmr.msra.gmra.mrb[4].mxu0 %vm204_vm1, %v377_v10 }
 0x443   : > { %815 = vmatpush3.bf16.msra.mxu0 %v497_v11  ;;  %816 = vmatprep.mubr.msk.bf16.mxu0 %vm876_vm0, %v875_v0 }
 0x444   : > { %v864_v12 = vpop.eup %863  ;;  %826 = vmatprep.subr.bf16.mxu0 %v875_v0 }
 0x445   : > { %v489_v13 = vmul.f32 %v864_v12, %v858_v58 }
 0x447   : > { %v490_v14 = vpack.c.bf16 %v489_v13, %v489_v13 }
 0x44a   : > { %817 = vmatmul.mubr.msk.bf16.vlgmr.msra.gmra.mrb[8].mxu0 %vm204_vm1, %v490_v14 }
 0x44b   : > { %828 = vmatprep.mubr.msk.bf16.mxu0 %vm876_vm0, %v875_v0 }
 0x466   : > { %v597_v15 = vpop.xlane.xlu1 %596 }
 0x467   : > { %865 = vrcp.f32 %v597_v15 }
 0x46a   : > { %v602_v16 = vpop.permute.xlu1 %601 }
 0x46b   : > { %v607_v17 = vsel %vm266_vm2, %v602_v16, 0 }
 0x46c   : > { %827 = vmatpush3.bf16.msra.mxu0 %v607_v17 }
 0x471   : > { %v866_v18 = vpop.eup %865 }
 0x472   : > { %v599_v19 = vmul.f32 %v866_v18, %v860_v1 }
 0x474   : > { %v600_v20 = vpack.c.bf16 %v599_v19, %v599_v19 }
 0x476   : > { %829 = vmatmul.mubr.msk.bf16.vlgmr.msra.gmra.mrb[12].mxu0 %vm204_vm1, %v600_v20 }
 0x515   : > { %v423_v21 = vpop.f32.mrb[4].mxu0 }
 0x516   : > { %650 = vrot.lane.b32.xlu0 %v423_v21, %s880_s27  ;;  %v806_v22 = vpop.f32.mrb[5].mxu0 }
 0x517   : > { %v426_v23 = vpop.f32.mrb[6].mxu0 }
 0x518   : > { %v807_v24 = vpop.f32.mrb[7].mxu0 }
 0x51d   : > { %v533_v25 = vpop.f32.mrb[8].mxu0 }
 0x51e   : > { %654 = vrot.lane.b32.xlu1 %v533_v25, %s881_s28  ;;  %v818_v0 = vpop.f32.mrb[9].mxu0 }
 0x51f   : > { %v536_v26 = vpop.f32.mrb[10].mxu0 }
 0x520   : > { %v819_v27 = vpop.f32.mrb[11].mxu0 }
 0x549   : > { %v643_v28 = vpop.f32.mrb[12].mxu0 }
 0x54a   : > { %658 = vrot.lane.b32.xlu0 %v643_v28, %s882_s29  ;;  %v830_v29 = vpop.f32.mrb[13].mxu0 }
 0x54b   : > { %v646_v30 = vpop.f32.mrb[14].mxu0 }
 0x54c   : > { %v831_v32 = vpop.f32.mrb[15].mxu0 }
 0x588   : > { %v651_v33 = vpop.permute.xlu0 %650 }
 0x589   : > { %v661_v35 = vsel %vm204_vm1, %v964_v31, %v651_v33 }
 0x590   : > { %v655_v34 = vpop.permute.xlu1 %654 }
 0x591   : > { %v663_v36 = vsel %vm662_vm3, %v661_v35, %v655_v34 }
 0x5bc   : > { %v659_v37 = vpop.permute.xlu0 %658 }
 0x5bd   : > { %v665_v38 = vsel %vm664_vm4, %v663_v36, %v659_v37 }
 0x5be   : > { %v666_v39 = vpack.c.bf16 %v665_v38, %v665_v38 }
 0x5c0   : > { %668 = vst.msk [vmem:[%s199_s5] sm:$0xf] %vm667_vm5, %v666_v39 }
 0x5c1 PF: > { %s13_s12 = sadd.s32 1, %s873_s12  }
 0x5c2   : > { %p10_p4 = scmp.ge.s32.totalorder %s13_s12, 4  }
 0x5c4   :  { %12 = sbr.rel (!%p10_p4) target bundleno = 1 (0x1), region = 68 }

// kernel: sentences_vec_forward.13
= control target key start
LH: loop header
LB: loop body
LE: loop exit
PB: predicated region body
PF: predicated region fallthrough
CT: control target
= control target key end

     0   :  { %v332_v0 = vmov 0.0   ;;  %vm333_vm0 = vmmov 0   ;;  %vm57_vm1 = vcmask 261120   ;;  %vm160_vm2 = vcmask 523264   ;;  %s418_s1 = inlined_call_operand.vmem [shape: bf16[32,64], index: 1, kind: input, shape index: {}]   ;;  %s419_s0 = inlined_call_operand.vmem [shape: bf16[16,32], index: 0, kind: input, shape index: {}]   ;;  %s420_s3 = inlined_call_operand.vmem [shape: bf16[64,32], index: 3, kind: input, shape index: {}]   ;;  %s421_s2 = inlined_call_operand.vmem [shape: f32[1,64], index: 2, kind: input, shape index: {}]   ;;  %s422_s4 = inlined_call_operand.vmem [shape: f32[1,32], index: 4, kind: input, shape index: {}]   ;;  %s423_s5 = inlined_call_operand.vmem [shape: f32[1,32], index: 5, kind: input, shape index: {}]   ;;  %s424_s6 = inlined_call_operand.vmem [shape: f32[1,32], index: 6, kind: input, shape index: {}]   ;;  %s425_s7 = inlined_call_operand.vmem [shape: bf16[16,32], index: 7, kind: output, shape index: {}]  }
   0x1   :  { %294 = vmatprep.subr.bf16.mxu0 %v332_v0  ;;  %v316_v1 = vld [vmem:[%s418_s1] sm:$0xff]   ;;  %298 = vmatprep.mubr.msk.bf16.mxu0 %vm333_vm0, %v332_v0  ;;  %v317_v2 = vld [vmem:[%s418_s1 + $0x8] sm:$0xff]   ;;  %v321_v6 = vld [vmem:[%s420_s3 + $0x10] sm:$0xff]   ;;  %vm262_vm3 = vcmask 257024  }
   0x2   :  { %302 = vmatprep.subr.bf16.mxu1 %v332_v0  ;;  %310 = vmatprep.mubr.msk.bf16.mxu1 %vm333_vm0, %v332_v0  ;;  %v27_v3 = vld [vmem:[%s419_s0] sm:$0xff]   ;;  %v320_v5 = vld [vmem:[%s420_s3 + $0x8] sm:$0xff]   ;;  %v322_v7 = vld [vmem:[%s420_s3 + $0x18] sm:$0xff]  }
   0x3   :  { %295 = vmatpush3.bf16.msra.mxu0 %v316_v1  ;;  %v319_v4 = vld [vmem:[%s420_s3] sm:$0xff]   ;;  %v205_v35 = vunpack.c.l.bf16 %v27_v3  ;;  %v206_v39 = vunpack.c.h.bf16 %v27_v3 }
   0x4   :  { %296 = vmatprep.subr.bf16.mxu0 %v332_v0  ;;  %303 = vmatpush3.bf16.msra.mxu1 %v319_v4  ;;  %v269_v8 = vld [vmem:[%s421_s2] ss:$0 sm:$0xff] }
   0x5   :  { %304 = vmatprep.subr.bf16.mxu1 %v332_v0  ;;  %v274_v34 = vld [vmem:[%s422_s4] ss:$0 sm:$0xff] }
   0x7   :  { %297 = vmatpush3.bf16.msra.mxu0 %v317_v2  ;;  %v281_v2 = vld [vmem:[%s424_s6] ss:$0 sm:$0xff] }
   0x8   :  { %305 = vmatpush3.bf16.msra.mxu1 %v320_v5 }
   0x9   :  { %306 = vmatprep.subr.bf16.mxu1 %v332_v0 }
   0xa   :  { %299 = vmatmul.mubr.msk.bf16.vlgmr.msra.gmra.mrb[0].mxu0 %vm57_vm1, %v27_v3 }
   0xc   :  { %307 = vmatpush3.bf16.msra.mxu1 %v321_v6 }
   0xd   :  { %308 = vmatprep.subr.bf16.mxu1 %v332_v0  ;;  %v280_v0 = vld [vmem:[%s423_s5] ss:$0 sm:$0xff] }
  0x10   :  { %309 = vmatpush3.bf16.msra.mxu1 %v322_v7 }
  0xdd   :  { %v95_v9 = vpop.f32.mrb[0].mxu0 }
  0xde   :  { %v96_v10 = vadd.f32 %v269_v8, %v95_v9  ;;  %v300_v11 = vpop.f32.mrb[1].mxu0 }
  0xdf   :  { %v98_v12 = vpop.f32.mrb[2].mxu0 }
  0xe0   :  { %v102_v13 = vmul.f32 %v96_v10, %v96_v10  ;;  %v99_v14 = vadd.f32 %v269_v8, %v98_v12  ;;  %v301_v15 = vpop.f32.mrb[3].mxu0 }
  0xe2   :  { %v104_v16 = vmul.f32 %v102_v13, %v96_v10  ;;  %v103_v17 = vmul.f32 %v99_v14, %v99_v14 }
  0xe4   :  { %v106_v18 = vmul.f32 0.044715, %v104_v16  ;;  %v105_v19 = vmul.f32 %v103_v17, %v99_v14 }
  0xe6   :  { %v108_v20 = vadd.f32 %v106_v18, %v96_v10  ;;  %v107_v21 = vmul.f32 0.044715, %v105_v19 }
  0xe8   :  { %v110_v22 = vmul.f32 0.7978846, %v108_v20  ;;  %v109_v23 = vadd.f32 %v107_v21, %v99_v14 }
  0xea   :  { %324 = vtanh.f32 %v110_v22  ;;  %v111_v24 = vmul.f32 0.7978846, %v109_v23 }
  0xec   :  { %326 = vtanh.f32 %v111_v24 }
  0xf4   :  { %v325_v25 = vpop.eup %324 }
  0xf5   :  { %v114_v26 = vadd.f32 1.0, %v325_v25 }
  0xf6   :  { %v327_v27 = vpop.eup %326 }
  0xf7   :  { %v116_v28 = vmul.f32 0.5, %v114_v26  ;;  %v115_v29 = vadd.f32 1.0, %v327_v27 }
  0xf9   :  { %v117_v30 = vmul.f32 0.5, %v115_v29  ;;  %v118_v31 = vmul.f32 %v116_v28, %v96_v10 }
  0xfb   :  { %v119_v32 = vmul.f32 %v117_v30, %v99_v14 }
  0xfd   :  { %v120_v33 = vpack.c.bf16 %v119_v32, %v118_v31 }
  0xff   :  { %311 = vmatmul.mubr.msk.bf16.vlgmr.msra.gmra.mrb[0].mxu1 %vm160_vm2, %v120_v33 }
 0x1d2   :  { %v198_v36 = vpop.f32.mrb[0].mxu1 }
 0x1d3   :  { %v199_v37 = vadd.f32 %v274_v34, %v198_v36  ;;  %v312_v38 = vpop.f32.mrb[1].mxu1 }
 0x1d4   :  { %v201_v40 = vpop.f32.mrb[2].mxu1 }
 0x1d5   :  { %v202_v41 = vadd.f32 %v274_v34, %v201_v40  ;;  %v313_v42 = vpop.f32.mrb[3].mxu1  ;;  %v207_v43 = vadd.f32 %v205_v35, %v199_v37 }
 0x1d7   :  { %v209_v44 = vsel %vm57_vm1, %v207_v43, 0.0  ;;  %v208_v45 = vadd.f32 %v206_v39, %v202_v41 }
 0x1d8   :  { %210 = vadd.xlane.f32.xlu0 %v209_v44 }
 0x1d9   :  { %v212_v46 = vsel %vm57_vm1, %v208_v45, 0.0 }
 0x1dc   :  { %213 = vadd.xlane.f32.xlu0 %v212_v46 }
 0x265   :  { %v211_v47 = vpop.xlane.xlu0 %210 }
 0x266   :  { %v216_v48 = vmul.f32 0.03125, %v211_v47 }
 0x268   :  { %v218_v49 = vsub.f32 %v207_v43, %v216_v48 }
 0x269   :  { %v214_v50 = vpop.xlane.xlu0 %213 }
 0x26a   :  { %v217_v51 = vmul.f32 0.03125, %v214_v50  ;;  %v220_v52 = vmul.f32 %v218_v49, %v218_v49 }
 0x26c   :  { %v219_v53 = vsub.f32 %v208_v45, %v217_v51  ;;  %v222_v54 = vsel %vm57_vm1, %v220_v52, 0.0 }
 0x26d   :  { %223 = vadd.xlane.f32.xlu1 %v222_v54 }
 0x26e   :  { %v221_v55 = vmul.f32 %v219_v53, %v219_v53 }
 0x270   :  { %v225_v56 = vsel %vm57_vm1, %v221_v55, 0.0 }
 0x271   :  { %226 = vadd.xlane.f32.xlu1 %v225_v56 }
 0x2fa   :  { %v224_v57 = vpop.xlane.xlu1 %223 }
 0x2fb   :  { %v228_v58 = vmul.f32 0.03125, %v224_v57 }
 0x2fd   :  { %v230_v59 = vadd.f32 1e-12, %v228_v58 }
 0x2fe   :  { %v227_v60 = vpop.xlane.xlu1 %226 }
 0x2ff   :  { %328 = vrsqrt.f32 %v230_v59  ;;  %v229_v61 = vmul.f32 0.03125, %v227_v60 }
 0x301   :  { %v231_v62 = vadd.f32 1e-12, %v229_v61 }
 0x303   :  { %330 = vrsqrt.f32 %v231_v62 }
 0x309   :  { %v329_v63 = vpop.eup %328 }
 0x30a   :  { %v234_v1 = vmul.f32 %v329_v63, %v218_v49 }
 0x30c   :  { %v243_v3 = vmul.f32 %v280_v0, %v234_v1 }
 0x30d   :  { %v331_v4 = vpop.eup %330 }
 0x30e   :  { %v252_v5 = vadd.f32 %v281_v2, %v243_v3  ;;  %v235_v6 = vmul.f32 %v331_v4, %v219_v53 }
 0x310   :  { %v284_v7 = vpack.c.bf16 %v252_v5, %v252_v5  ;;  %v244_v8 = vmul.f32 %v280_v0, %v235_v6 }
 0x312   :  { %263 = vst.msk [vmem:[%s425_s7] sm:$0xf] %vm262_vm3, %v284_v7  ;;  %v253_v9 = vadd.f32 %v281_v2, %v244_v8 }
 0x314   :  { %v285_v10 = vpack.c.bf16 %v253_v9, %v253_v9 }
 0x316   :  { %264 = vst.msk [vmem:[%s425_s7 + $0x4] sm:$0xf] %vm262_vm3, %v285_v10 }

</bundles_post_ra>
